<compile_context>
chip_gen: v7x
topology: tpu7x:2x2x1
jax: 0.10.0
libtpu: 0.0.40
codegen_flags: <defaults>
</compile_context>

<pallas_src>
import jax
import jax.numpy as jnp
from jax.experimental import pallas as pl
from jax.experimental.pallas import tpu as pltpu

# Module hyper-parameters (the PyTorch file uses globals PRED_LEN/H_DIM/EMBEDDING_DIM)
PRED_LEN = 8
H_DIM = 32
EMBEDDING_DIM = 16

_HIGH = jax.lax.Precision.HIGHEST


def _dot(a, b):
    return jnp.dot(a, b, precision=_HIGH, preferred_element_type=jnp.float32)


def _decoder_kernel(lpr_ref, h0_ref, c0_ref,
                    w_in_ref, w_hh_ref, w_rec_ref,
                    b0_ref, b_rec_ref,
                    w_out_ref, b_out_ref,
                    out_ref):
    """All PRED_LEN decode steps in one invocation; state carried in vregs."""
    H = H_DIM

    h = h0_ref[...]
    c = c0_ref[...]

    w_hh = w_hh_ref[...]
    w_rec = w_rec_ref[...]
    b0 = b0_ref[...]
    b_rec = b_rec_ref[...]
    w_out = w_out_ref[...]
    b_out = b_out_ref[...]

    def lstm_cell(gates, c_prev):
        # PyTorch gate order: i, f, g, o.
        i_g = jax.nn.sigmoid(gates[:, 0 * H:1 * H])
        f_g = jax.nn.sigmoid(gates[:, 1 * H:2 * H])
        g_g = jnp.tanh(gates[:, 2 * H:3 * H])
        o_g = jax.nn.sigmoid(gates[:, 3 * H:4 * H])
        c_new = f_g * c_prev + i_g * g_g
        h_new = o_g * jnp.tanh(c_new)
        return h_new, c_new

    outs = []

    # Step 0: input comes from last_pos_rel (folded through w_in = w_emb @ w_ih).
    gates = _dot(lpr_ref[...], w_in_ref[...]) + _dot(h, w_hh) + b0
    h, c = lstm_cell(gates, c)
    outs.append(_dot(h, w_out) + b_out)

    # Steps 1..PRED_LEN-1: fully folded recurrence (one matmul per step).
    for _ in range(1, PRED_LEN):
        gates = _dot(h, w_rec) + b_rec
        h, c = lstm_cell(gates, c)
        outs.append(_dot(h, w_out) + b_out)

    # Single lane-dense store: (npeds_p, PRED_LEN*2).
    out_ref[...] = jnp.concatenate(outs, axis=1)

    # Note: `last_pos`/`curr_pos` in the PyTorch code never feed the returned
    # tensor, so they do not appear in the kernel.


def decoder_forward(last_pos, last_pos_rel, state_tuple, params):
    """Pallas equivalent of Decoder.forward.

    last_pos:      (npeds, 2)  -- unused by the returned value (matches PyTorch)
    last_pos_rel:  (npeds, 2)
    state_tuple:   (h0, c0) each (1, npeds, H_DIM)
    returns:       (PRED_LEN, npeds, 2)
    """
    del last_pos  # does not influence pred_traj_fake_rel
    h0 = state_tuple[0][0]  # (npeds, H)
    c0 = state_tuple[1][0]
    npeds = last_pos_rel.shape[0]
    H = H_DIM

    # Pad pedestrians to a multiple of 8 (f32 sublane granularity).
    npeds_p = max(8, ((npeds + 7) // 8) * 8)
    pad = npeds_p - npeds
    if pad:
        last_pos_rel = jnp.pad(last_pos_rel, ((0, pad), (0, 0)))
        h0 = jnp.pad(h0, ((0, pad), (0, 0)))
        c0 = jnp.pad(c0, ((0, pad), (0, 0)))

    # Weight-only fold of the linear embed/head chain into the recurrence.
    w_emb, b_emb = params["w_emb"], params["b_emb"]
    w_ih, b_ih = params["w_ih"], params["b_ih"]
    w_hh, b_hh = params["w_hh"], params["b_hh"]
    w_out, b_out = params["w_out"], params["b_out"]

    w_in = _dot(w_emb, w_ih)                 # (2, 4H)
    b0 = b_ih + b_hh + _dot(b_emb, w_ih)     # (1, 4H)
    w_rec = w_hh + _dot(w_out, w_in)         # (H, 4H)
    b_rec = b0 + _dot(b_out, w_in)           # (1, 4H)

    full = lambda shape: pl.BlockSpec(shape, lambda i: (0,) * len(shape))

    in_specs = [
        full((npeds_p, 2)),        # last_pos_rel
        full((npeds_p, H)),        # h0
        full((npeds_p, H)),        # c0
        full((2, 4 * H)),          # w_in
        full((H, 4 * H)),          # w_hh
        full((H, 4 * H)),          # w_rec
        full((1, 4 * H)),          # b0
        full((1, 4 * H)),          # b_rec
        full((H, 2)),              # w_out
        full((1, 2)),              # b_out
    ]
    out_spec = full((npeds_p, PRED_LEN * 2))

    packed = pl.pallas_call(
        _decoder_kernel,
        out_shape=jax.ShapeDtypeStruct((npeds_p, PRED_LEN * 2), jnp.float32),
        grid_spec=pltpu.PrefetchScalarGridSpec(
            num_scalar_prefetch=0,
            grid=(1,),
            in_specs=in_specs,
            out_specs=out_spec,
        ),
        compiler_params=pltpu.CompilerParams(
            dimension_semantics=("arbitrary",)),
    )(last_pos_rel, h0, c0, w_in, w_hh, w_rec, b0, b_rec, w_out, b_out)

    # (npeds_p, PRED_LEN*2) -> (PRED_LEN, npeds, 2) (PyTorch layout).
    out = packed.reshape(npeds_p, PRED_LEN, 2)
    out = jnp.transpose(out, (1, 0, 2))[:, :npeds, :]
    return out


def decoder_reference(last_pos_rel, state_tuple, params):
    """Pure-JAX reference (faithful, unfolded PyTorch math) for validation."""
    h, c = state_tuple[0][0], state_tuple[1][0]
    H = H_DIM
    x = _dot(last_pos_rel, params["w_emb"]) + params["b_emb"]
    outs = []
    for _ in range(PRED_LEN):
        gates = (_dot(x, params["w_ih"]) + params["b_ih"]
                 + _dot(h, params["w_hh"]) + params["b_hh"])
        i = jax.nn.sigmoid(gates[:, 0 * H:1 * H])
        f = jax.nn.sigmoid(gates[:, 1 * H:2 * H])
        g = jnp.tanh(gates[:, 2 * H:3 * H])
        o = jax.nn.sigmoid(gates[:, 3 * H:4 * H])
        c = f * c + i * g
        h = o * jnp.tanh(c)
        rel_pos = _dot(h, params["w_out"]) + params["b_out"]
        outs.append(rel_pos)
        x = _dot(rel_pos, params["w_emb"]) + params["b_emb"]
    return jnp.stack(outs, axis=0)


def init_params(key):
    ks = jax.random.split(key, 8)
    E, H = EMBEDDING_DIM, H_DIM
    u = lambda k, shape, s: jax.random.uniform(k, shape, jnp.float32, -s, s)
    return {
        # spatial_embedding: Linear(2, E)    (stored transposed: (in, out))
        "w_emb": u(ks[0], (2, E), 1.0 / jnp.sqrt(2.0)),
        "b_emb": u(ks[1], (1, E), 1.0 / jnp.sqrt(2.0)),
        # LSTM(E, H): weight_ih (4H, E) -> (E, 4H); weight_hh (4H, H) -> (H, 4H)
        "w_ih": u(ks[2], (E, 4 * H), 1.0 / jnp.sqrt(H)),
        "b_ih": u(ks[3], (1, 4 * H), 1.0 / jnp.sqrt(H)),
        "w_hh": u(ks[4], (H, 4 * H), 1.0 / jnp.sqrt(H)),
        "b_hh": u(ks[5], (1, 4 * H), 1.0 / jnp.sqrt(H)),
        # hidden2pos: Linear(H, 2)
        "w_out": u(ks[6], (H, 2), 1.0 / jnp.sqrt(H)),
        "b_out": u(ks[7], (1, 2), 1.0 / jnp.sqrt(H)),
    }


if __name__ == "__main__":
    npeds = 8
    key = jax.random.PRNGKey(0)
    k_par, k_lp, k_lpr, k_h, k_c = jax.random.split(key, 5)

    params = init_params(k_par)
    last_pos = jax.random.normal(k_lp, (npeds, 2), jnp.float32)
    last_pos_rel = jax.random.normal(k_lpr, (npeds, 2), jnp.float32)
    h0 = jax.random.normal(k_h, (1, npeds, H_DIM), jnp.float32)
    c0 = jax.random.normal(k_c, (1, npeds, H_DIM), jnp.float32)
    state_tuple = (h0, c0)

    out = decoder_forward(last_pos, last_pos_rel, state_tuple, params)
    out = jax.block_until_ready(out)
    assert out.shape == (PRED_LEN, npeds, 2), out.shape

    ref = decoder_reference(last_pos_rel, state_tuple, params)
    assert jnp.allclose(out, ref, atol=1e-4, rtol=1e-4), float(
        jnp.max(jnp.abs(out - ref)))

    print("KERNEL_OK")
</pallas_src>

<mosaic_0001>
module attributes {stable_mosaic.version = 11 : i64} {
  func.func @_decoder_kernel(%arg0: i32, %arg1: memref<8x2xf32, #tpu.memory_space<vmem>>, %arg2: memref<8x32xf32, #tpu.memory_space<vmem>>, %arg3: memref<8x32xf32, #tpu.memory_space<vmem>>, %arg4: memref<2x128xf32, #tpu.memory_space<vmem>>, %arg5: memref<32x128xf32, #tpu.memory_space<vmem>>, %arg6: memref<32x128xf32, #tpu.memory_space<vmem>>, %arg7: memref<1x128xf32, #tpu.memory_space<vmem>>, %arg8: memref<1x128xf32, #tpu.memory_space<vmem>>, %arg9: memref<32x2xf32, #tpu.memory_space<vmem>>, %arg10: memref<1x2xf32, #tpu.memory_space<vmem>>, %arg11: memref<8x16xf32, #tpu.memory_space<vmem>>) attributes {dimension_semantics = [#tpu.dimension_semantics<arbitrary>], iteration_bounds = array<i64: 1>, scalar_prefetch = 0 : i64, scratch_operands = 0 : i64, tpu.core_type = #tpu.core_type<tc>, window_params = [{pipeline_mode = #tpu.pipeline_mode<synchronous>, transform_indices = @transform_0, window_bounds = array<i64: 8, 2>}, {pipeline_mode = #tpu.pipeline_mode<synchronous>, transform_indices = @transform_1, window_bounds = array<i64: 8, 32>}, {pipeline_mode = #tpu.pipeline_mode<synchronous>, transform_indices = @transform_2, window_bounds = array<i64: 8, 32>}, {pipeline_mode = #tpu.pipeline_mode<synchronous>, transform_indices = @transform_3, window_bounds = array<i64: 2, 128>}, {pipeline_mode = #tpu.pipeline_mode<synchronous>, transform_indices = @transform_4, window_bounds = array<i64: 32, 128>}, {pipeline_mode = #tpu.pipeline_mode<synchronous>, transform_indices = @transform_5, window_bounds = array<i64: 32, 128>}, {pipeline_mode = #tpu.pipeline_mode<synchronous>, transform_indices = @transform_6, window_bounds = array<i64: 1, 128>}, {pipeline_mode = #tpu.pipeline_mode<synchronous>, transform_indices = @transform_7, window_bounds = array<i64: 1, 128>}, {pipeline_mode = #tpu.pipeline_mode<synchronous>, transform_indices = @transform_8, window_bounds = array<i64: 32, 2>}, {pipeline_mode = #tpu.pipeline_mode<synchronous>, transform_indices = @transform_9, window_bounds = array<i64: 1, 2>}, {pipeline_mode = #tpu.pipeline_mode<synchronous>, transform_indices = @transform_10, window_bounds = array<i64: 8, 16>}]} {
    %c0 = arith.constant 0 : index
    %c0_0 = arith.constant 0 : index
    %0 = vector.load %arg2[%c0, %c0_0] : memref<8x32xf32, #tpu.memory_space<vmem>>, vector<8x32xf32>
    %c0_1 = arith.constant 0 : index
    %c0_2 = arith.constant 0 : index
    %1 = vector.load %arg3[%c0_1, %c0_2] : memref<8x32xf32, #tpu.memory_space<vmem>>, vector<8x32xf32>
    %c0_3 = arith.constant 0 : index
    %c0_4 = arith.constant 0 : index
    %2 = vector.load %arg5[%c0_3, %c0_4] : memref<32x128xf32, #tpu.memory_space<vmem>>, vector<32x128xf32>
    %c0_5 = arith.constant 0 : index
    %c0_6 = arith.constant 0 : index
    %3 = vector.load %arg6[%c0_5, %c0_6] : memref<32x128xf32, #tpu.memory_space<vmem>>, vector<32x128xf32>
    %c0_7 = arith.constant 0 : index
    %c0_8 = arith.constant 0 : index
    %4 = vector.load %arg7[%c0_7, %c0_8] : memref<1x128xf32, #tpu.memory_space<vmem>>, vector<1x128xf32>
    %c0_9 = arith.constant 0 : index
    %c0_10 = arith.constant 0 : index
    %5 = vector.load %arg8[%c0_9, %c0_10] : memref<1x128xf32, #tpu.memory_space<vmem>>, vector<1x128xf32>
    %c0_11 = arith.constant 0 : index
    %c0_12 = arith.constant 0 : index
    %6 = vector.load %arg9[%c0_11, %c0_12] : memref<32x2xf32, #tpu.memory_space<vmem>>, vector<32x2xf32>
    %c0_13 = arith.constant 0 : index
    %c0_14 = arith.constant 0 : index
    %7 = vector.load %arg10[%c0_13, %c0_14] : memref<1x2xf32, #tpu.memory_space<vmem>>, vector<1x2xf32>
    %c0_15 = arith.constant 0 : index
    %c0_16 = arith.constant 0 : index
    %8 = vector.load %arg1[%c0_15, %c0_16] : memref<8x2xf32, #tpu.memory_space<vmem>>, vector<8x2xf32>
    %c0_17 = arith.constant 0 : index
    %c0_18 = arith.constant 0 : index
    %9 = vector.load %arg4[%c0_17, %c0_18] : memref<2x128xf32, #tpu.memory_space<vmem>>, vector<2x128xf32>
    %cst = arith.constant dense<0.000000e+00> : vector<8x128xf32>
    %10 = tpu.matmul %8, %9, %cst {dimension_numbers = #tpu.dot_dimension_numbers<[1], [0], [0], [1], [0, 0, 1, 1], [], []>, precision = #tpu.contract_precision<fp32>} : vector<8x2xf32>, vector<2x128xf32>, vector<8x128xf32> -> vector<8x128xf32>
    %cst_19 = arith.constant dense<0.000000e+00> : vector<8x128xf32>
    %11 = tpu.matmul %0, %2, %cst_19 {dimension_numbers = #tpu.dot_dimension_numbers<[1], [0], [0], [1], [0, 0, 1, 1], [], []>, precision = #tpu.contract_precision<fp32>} : vector<8x32xf32>, vector<32x128xf32>, vector<8x128xf32> -> vector<8x128xf32>
    %12 = arith.addf %10, %11 : vector<8x128xf32>
    %13 = vector.broadcast %4 : vector<1x128xf32> to vector<8x128xf32>
    %14 = arith.addf %12, %13 : vector<8x128xf32>
    %15 = vector.extract_strided_slice %14 {offsets = [0, 0], sizes = [8, 32], strides = [1, 1]} : vector<8x128xf32> to vector<8x32xf32>
    %16 = arith.negf %15 : vector<8x32xf32>
    %17 = math.exp %16 : vector<8x32xf32>
    %cst_20 = arith.constant 1.000000e+00 : f32
    %18 = vector.broadcast %cst_20 : f32 to vector<8x32xf32>
    %19 = arith.addf %18, %17 : vector<8x32xf32>
    %20 = arith.divf %18, %19 : vector<8x32xf32>
    %21 = vector.extract_strided_slice %14 {offsets = [0, 32], sizes = [8, 32], strides = [1, 1]} : vector<8x128xf32> to vector<8x32xf32>
    %22 = arith.negf %21 : vector<8x32xf32>
    %23 = math.exp %22 : vector<8x32xf32>
    %cst_21 = arith.constant 1.000000e+00 : f32
    %24 = vector.broadcast %cst_21 : f32 to vector<8x32xf32>
    %25 = arith.addf %24, %23 : vector<8x32xf32>
    %26 = arith.divf %24, %25 : vector<8x32xf32>
    %27 = vector.extract_strided_slice %14 {offsets = [0, 64], sizes = [8, 32], strides = [1, 1]} : vector<8x128xf32> to vector<8x32xf32>
    %28 = math.tanh %27 : vector<8x32xf32>
    %29 = vector.extract_strided_slice %14 {offsets = [0, 96], sizes = [8, 32], strides = [1, 1]} : vector<8x128xf32> to vector<8x32xf32>
    %30 = arith.negf %29 : vector<8x32xf32>
    %31 = math.exp %30 : vector<8x32xf32>
    %cst_22 = arith.constant 1.000000e+00 : f32
    %32 = vector.broadcast %cst_22 : f32 to vector<8x32xf32>
    %33 = arith.addf %32, %31 : vector<8x32xf32>
    %34 = arith.divf %32, %33 : vector<8x32xf32>
    %35 = arith.mulf %26, %1 : vector<8x32xf32>
    %36 = arith.mulf %20, %28 : vector<8x32xf32>
    %37 = arith.addf %35, %36 : vector<8x32xf32>
    %38 = math.tanh %37 : vector<8x32xf32>
    %39 = arith.mulf %34, %38 : vector<8x32xf32>
    %cst_23 = arith.constant dense<0.000000e+00> : vector<8x2xf32>
    %40 = tpu.matmul %39, %6, %cst_23 {dimension_numbers = #tpu.dot_dimension_numbers<[1], [0], [0], [1], [0, 0, 1, 1], [], []>, precision = #tpu.contract_precision<fp32>} : vector<8x32xf32>, vector<32x2xf32>, vector<8x2xf32> -> vector<8x2xf32>
    %41 = vector.broadcast %7 : vector<1x2xf32> to vector<8x2xf32>
    %42 = arith.addf %40, %41 : vector<8x2xf32>
    %cst_24 = arith.constant dense<0.000000e+00> : vector<8x128xf32>
    %43 = tpu.matmul %39, %3, %cst_24 {dimension_numbers = #tpu.dot_dimension_numbers<[1], [0], [0], [1], [0, 0, 1, 1], [], []>, precision = #tpu.contract_precision<fp32>} : vector<8x32xf32>, vector<32x128xf32>, vector<8x128xf32> -> vector<8x128xf32>
    %44 = vector.broadcast %5 : vector<1x128xf32> to vector<8x128xf32>
    %45 = arith.addf %43, %44 : vector<8x128xf32>
    %46 = vector.extract_strided_slice %45 {offsets = [0, 0], sizes = [8, 32], strides = [1, 1]} : vector<8x128xf32> to vector<8x32xf32>
    %47 = arith.negf %46 : vector<8x32xf32>
    %48 = math.exp %47 : vector<8x32xf32>
    %cst_25 = arith.constant 1.000000e+00 : f32
    %49 = vector.broadcast %cst_25 : f32 to vector<8x32xf32>
    %50 = arith.addf %49, %48 : vector<8x32xf32>
    %51 = arith.divf %49, %50 : vector<8x32xf32>
    %52 = vector.extract_strided_slice %45 {offsets = [0, 32], sizes = [8, 32], strides = [1, 1]} : vector<8x128xf32> to vector<8x32xf32>
    %53 = arith.negf %52 : vector<8x32xf32>
    %54 = math.exp %53 : vector<8x32xf32>
    %cst_26 = arith.constant 1.000000e+00 : f32
    %55 = vector.broadcast %cst_26 : f32 to vector<8x32xf32>
    %56 = arith.addf %55, %54 : vector<8x32xf32>
    %57 = arith.divf %55, %56 : vector<8x32xf32>
    %58 = vector.extract_strided_slice %45 {offsets = [0, 64], sizes = [8, 32], strides = [1, 1]} : vector<8x128xf32> to vector<8x32xf32>
    %59 = math.tanh %58 : vector<8x32xf32>
    %60 = vector.extract_strided_slice %45 {offsets = [0, 96], sizes = [8, 32], strides = [1, 1]} : vector<8x128xf32> to vector<8x32xf32>
    %61 = arith.negf %60 : vector<8x32xf32>
    %62 = math.exp %61 : vector<8x32xf32>
    %cst_27 = arith.constant 1.000000e+00 : f32
    %63 = vector.broadcast %cst_27 : f32 to vector<8x32xf32>
    %64 = arith.addf %63, %62 : vector<8x32xf32>
    %65 = arith.divf %63, %64 : vector<8x32xf32>
    %66 = arith.mulf %57, %37 : vector<8x32xf32>
    %67 = arith.mulf %51, %59 : vector<8x32xf32>
    %68 = arith.addf %66, %67 : vector<8x32xf32>
    %69 = math.tanh %68 : vector<8x32xf32>
    %70 = arith.mulf %65, %69 : vector<8x32xf32>
    %cst_28 = arith.constant dense<0.000000e+00> : vector<8x2xf32>
    %71 = tpu.matmul %70, %6, %cst_28 {dimension_numbers = #tpu.dot_dimension_numbers<[1], [0], [0], [1], [0, 0, 1, 1], [], []>, precision = #tpu.contract_precision<fp32>} : vector<8x32xf32>, vector<32x2xf32>, vector<8x2xf32> -> vector<8x2xf32>
    %72 = vector.broadcast %7 : vector<1x2xf32> to vector<8x2xf32>
    %73 = arith.addf %71, %72 : vector<8x2xf32>
    %cst_29 = arith.constant dense<0.000000e+00> : vector<8x128xf32>
    %74 = tpu.matmul %70, %3, %cst_29 {dimension_numbers = #tpu.dot_dimension_numbers<[1], [0], [0], [1], [0, 0, 1, 1], [], []>, precision = #tpu.contract_precision<fp32>} : vector<8x32xf32>, vector<32x128xf32>, vector<8x128xf32> -> vector<8x128xf32>
    %75 = vector.broadcast %5 : vector<1x128xf32> to vector<8x128xf32>
    %76 = arith.addf %74, %75 : vector<8x128xf32>
    %77 = vector.extract_strided_slice %76 {offsets = [0, 0], sizes = [8, 32], strides = [1, 1]} : vector<8x128xf32> to vector<8x32xf32>
    %78 = arith.negf %77 : vector<8x32xf32>
    %79 = math.exp %78 : vector<8x32xf32>
    %cst_30 = arith.constant 1.000000e+00 : f32
    %80 = vector.broadcast %cst_30 : f32 to vector<8x32xf32>
    %81 = arith.addf %80, %79 : vector<8x32xf32>
    %82 = arith.divf %80, %81 : vector<8x32xf32>
    %83 = vector.extract_strided_slice %76 {offsets = [0, 32], sizes = [8, 32], strides = [1, 1]} : vector<8x128xf32> to vector<8x32xf32>
    %84 = arith.negf %83 : vector<8x32xf32>
    %85 = math.exp %84 : vector<8x32xf32>
    %cst_31 = arith.constant 1.000000e+00 : f32
    %86 = vector.broadcast %cst_31 : f32 to vector<8x32xf32>
    %87 = arith.addf %86, %85 : vector<8x32xf32>
    %88 = arith.divf %86, %87 : vector<8x32xf32>
    %89 = vector.extract_strided_slice %76 {offsets = [0, 64], sizes = [8, 32], strides = [1, 1]} : vector<8x128xf32> to vector<8x32xf32>
    %90 = math.tanh %89 : vector<8x32xf32>
    %91 = vector.extract_strided_slice %76 {offsets = [0, 96], sizes = [8, 32], strides = [1, 1]} : vector<8x128xf32> to vector<8x32xf32>
    %92 = arith.negf %91 : vector<8x32xf32>
    %93 = math.exp %92 : vector<8x32xf32>
    %cst_32 = arith.constant 1.000000e+00 : f32
    %94 = vector.broadcast %cst_32 : f32 to vector<8x32xf32>
    %95 = arith.addf %94, %93 : vector<8x32xf32>
    %96 = arith.divf %94, %95 : vector<8x32xf32>
    %97 = arith.mulf %88, %68 : vector<8x32xf32>
    %98 = arith.mulf %82, %90 : vector<8x32xf32>
    %99 = arith.addf %97, %98 : vector<8x32xf32>
    %100 = math.tanh %99 : vector<8x32xf32>
    %101 = arith.mulf %96, %100 : vector<8x32xf32>
    %cst_33 = arith.constant dense<0.000000e+00> : vector<8x2xf32>
    %102 = tpu.matmul %101, %6, %cst_33 {dimension_numbers = #tpu.dot_dimension_numbers<[1], [0], [0], [1], [0, 0, 1, 1], [], []>, precision = #tpu.contract_precision<fp32>} : vector<8x32xf32>, vector<32x2xf32>, vector<8x2xf32> -> vector<8x2xf32>
    %103 = vector.broadcast %7 : vector<1x2xf32> to vector<8x2xf32>
    %104 = arith.addf %102, %103 : vector<8x2xf32>
    %cst_34 = arith.constant dense<0.000000e+00> : vector<8x128xf32>
    %105 = tpu.matmul %101, %3, %cst_34 {dimension_numbers = #tpu.dot_dimension_numbers<[1], [0], [0], [1], [0, 0, 1, 1], [], []>, precision = #tpu.contract_precision<fp32>} : vector<8x32xf32>, vector<32x128xf32>, vector<8x128xf32> -> vector<8x128xf32>
    %106 = vector.broadcast %5 : vector<1x128xf32> to vector<8x128xf32>
    %107 = arith.addf %105, %106 : vector<8x128xf32>
    %108 = vector.extract_strided_slice %107 {offsets = [0, 0], sizes = [8, 32], strides = [1, 1]} : vector<8x128xf32> to vector<8x32xf32>
    %109 = arith.negf %108 : vector<8x32xf32>
    %110 = math.exp %109 : vector<8x32xf32>
    %cst_35 = arith.constant 1.000000e+00 : f32
    %111 = vector.broadcast %cst_35 : f32 to vector<8x32xf32>
    %112 = arith.addf %111, %110 : vector<8x32xf32>
    %113 = arith.divf %111, %112 : vector<8x32xf32>
    %114 = vector.extract_strided_slice %107 {offsets = [0, 32], sizes = [8, 32], strides = [1, 1]} : vector<8x128xf32> to vector<8x32xf32>
    %115 = arith.negf %114 : vector<8x32xf32>
    %116 = math.exp %115 : vector<8x32xf32>
    %cst_36 = arith.constant 1.000000e+00 : f32
    %117 = vector.broadcast %cst_36 : f32 to vector<8x32xf32>
    %118 = arith.addf %117, %116 : vector<8x32xf32>
    %119 = arith.divf %117, %118 : vector<8x32xf32>
    %120 = vector.extract_strided_slice %107 {offsets = [0, 64], sizes = [8, 32], strides = [1, 1]} : vector<8x128xf32> to vector<8x32xf32>
    %121 = math.tanh %120 : vector<8x32xf32>
    %122 = vector.extract_strided_slice %107 {offsets = [0, 96], sizes = [8, 32], strides = [1, 1]} : vector<8x128xf32> to vector<8x32xf32>
    %123 = arith.negf %122 : vector<8x32xf32>
    %124 = math.exp %123 : vector<8x32xf32>
    %cst_37 = arith.constant 1.000000e+00 : f32
    %125 = vector.broadcast %cst_37 : f32 to vector<8x32xf32>
    %126 = arith.addf %125, %124 : vector<8x32xf32>
    %127 = arith.divf %125, %126 : vector<8x32xf32>
    %128 = arith.mulf %119, %99 : vector<8x32xf32>
    %129 = arith.mulf %113, %121 : vector<8x32xf32>
    %130 = arith.addf %128, %129 : vector<8x32xf32>
    %131 = math.tanh %130 : vector<8x32xf32>
    %132 = arith.mulf %127, %131 : vector<8x32xf32>
    %cst_38 = arith.constant dense<0.000000e+00> : vector<8x2xf32>
    %133 = tpu.matmul %132, %6, %cst_38 {dimension_numbers = #tpu.dot_dimension_numbers<[1], [0], [0], [1], [0, 0, 1, 1], [], []>, precision = #tpu.contract_precision<fp32>} : vector<8x32xf32>, vector<32x2xf32>, vector<8x2xf32> -> vector<8x2xf32>
    %134 = vector.broadcast %7 : vector<1x2xf32> to vector<8x2xf32>
    %135 = arith.addf %133, %134 : vector<8x2xf32>
    %cst_39 = arith.constant dense<0.000000e+00> : vector<8x128xf32>
    %136 = tpu.matmul %132, %3, %cst_39 {dimension_numbers = #tpu.dot_dimension_numbers<[1], [0], [0], [1], [0, 0, 1, 1], [], []>, precision = #tpu.contract_precision<fp32>} : vector<8x32xf32>, vector<32x128xf32>, vector<8x128xf32> -> vector<8x128xf32>
    %137 = vector.broadcast %5 : vector<1x128xf32> to vector<8x128xf32>
    %138 = arith.addf %136, %137 : vector<8x128xf32>
    %139 = vector.extract_strided_slice %138 {offsets = [0, 0], sizes = [8, 32], strides = [1, 1]} : vector<8x128xf32> to vector<8x32xf32>
    %140 = arith.negf %139 : vector<8x32xf32>
    %141 = math.exp %140 : vector<8x32xf32>
    %cst_40 = arith.constant 1.000000e+00 : f32
    %142 = vector.broadcast %cst_40 : f32 to vector<8x32xf32>
    %143 = arith.addf %142, %141 : vector<8x32xf32>
    %144 = arith.divf %142, %143 : vector<8x32xf32>
    %145 = vector.extract_strided_slice %138 {offsets = [0, 32], sizes = [8, 32], strides = [1, 1]} : vector<8x128xf32> to vector<8x32xf32>
    %146 = arith.negf %145 : vector<8x32xf32>
    %147 = math.exp %146 : vector<8x32xf32>
    %cst_41 = arith.constant 1.000000e+00 : f32
    %148 = vector.broadcast %cst_41 : f32 to vector<8x32xf32>
    %149 = arith.addf %148, %147 : vector<8x32xf32>
    %150 = arith.divf %148, %149 : vector<8x32xf32>
    %151 = vector.extract_strided_slice %138 {offsets = [0, 64], sizes = [8, 32], strides = [1, 1]} : vector<8x128xf32> to vector<8x32xf32>
    %152 = math.tanh %151 : vector<8x32xf32>
    %153 = vector.extract_strided_slice %138 {offsets = [0, 96], sizes = [8, 32], strides = [1, 1]} : vector<8x128xf32> to vector<8x32xf32>
    %154 = arith.negf %153 : vector<8x32xf32>
    %155 = math.exp %154 : vector<8x32xf32>
    %cst_42 = arith.constant 1.000000e+00 : f32
    %156 = vector.broadcast %cst_42 : f32 to vector<8x32xf32>
    %157 = arith.addf %156, %155 : vector<8x32xf32>
    %158 = arith.divf %156, %157 : vector<8x32xf32>
    %159 = arith.mulf %150, %130 : vector<8x32xf32>
    %160 = arith.mulf %144, %152 : vector<8x32xf32>
    %161 = arith.addf %159, %160 : vector<8x32xf32>
    %162 = math.tanh %161 : vector<8x32xf32>
    %163 = arith.mulf %158, %162 : vector<8x32xf32>
    %cst_43 = arith.constant dense<0.000000e+00> : vector<8x2xf32>
    %164 = tpu.matmul %163, %6, %cst_43 {dimension_numbers = #tpu.dot_dimension_numbers<[1], [0], [0], [1], [0, 0, 1, 1], [], []>, precision = #tpu.contract_precision<fp32>} : vector<8x32xf32>, vector<32x2xf32>, vector<8x2xf32> -> vector<8x2xf32>
    %165 = vector.broadcast %7 : vector<1x2xf32> to vector<8x2xf32>
    %166 = arith.addf %164, %165 : vector<8x2xf32>
    %cst_44 = arith.constant dense<0.000000e+00> : vector<8x128xf32>
    %167 = tpu.matmul %163, %3, %cst_44 {dimension_numbers = #tpu.dot_dimension_numbers<[1], [0], [0], [1], [0, 0, 1, 1], [], []>, precision = #tpu.contract_precision<fp32>} : vector<8x32xf32>, vector<32x128xf32>, vector<8x128xf32> -> vector<8x128xf32>
    %168 = vector.broadcast %5 : vector<1x128xf32> to vector<8x128xf32>
    %169 = arith.addf %167, %168 : vector<8x128xf32>
    %170 = vector.extract_strided_slice %169 {offsets = [0, 0], sizes = [8, 32], strides = [1, 1]} : vector<8x128xf32> to vector<8x32xf32>
    %171 = arith.negf %170 : vector<8x32xf32>
    %172 = math.exp %171 : vector<8x32xf32>
    %cst_45 = arith.constant 1.000000e+00 : f32
    %173 = vector.broadcast %cst_45 : f32 to vector<8x32xf32>
    %174 = arith.addf %173, %172 : vector<8x32xf32>
    %175 = arith.divf %173, %174 : vector<8x32xf32>
    %176 = vector.extract_strided_slice %169 {offsets = [0, 32], sizes = [8, 32], strides = [1, 1]} : vector<8x128xf32> to vector<8x32xf32>
    %177 = arith.negf %176 : vector<8x32xf32>
    %178 = math.exp %177 : vector<8x32xf32>
    %cst_46 = arith.constant 1.000000e+00 : f32
    %179 = vector.broadcast %cst_46 : f32 to vector<8x32xf32>
    %180 = arith.addf %179, %178 : vector<8x32xf32>
    %181 = arith.divf %179, %180 : vector<8x32xf32>
    %182 = vector.extract_strided_slice %169 {offsets = [0, 64], sizes = [8, 32], strides = [1, 1]} : vector<8x128xf32> to vector<8x32xf32>
    %183 = math.tanh %182 : vector<8x32xf32>
    %184 = vector.extract_strided_slice %169 {offsets = [0, 96], sizes = [8, 32], strides = [1, 1]} : vector<8x128xf32> to vector<8x32xf32>
    %185 = arith.negf %184 : vector<8x32xf32>
    %186 = math.exp %185 : vector<8x32xf32>
    %cst_47 = arith.constant 1.000000e+00 : f32
    %187 = vector.broadcast %cst_47 : f32 to vector<8x32xf32>
    %188 = arith.addf %187, %186 : vector<8x32xf32>
    %189 = arith.divf %187, %188 : vector<8x32xf32>
    %190 = arith.mulf %181, %161 : vector<8x32xf32>
    %191 = arith.mulf %175, %183 : vector<8x32xf32>
    %192 = arith.addf %190, %191 : vector<8x32xf32>
    %193 = math.tanh %192 : vector<8x32xf32>
    %194 = arith.mulf %189, %193 : vector<8x32xf32>
    %cst_48 = arith.constant dense<0.000000e+00> : vector<8x2xf32>
    %195 = tpu.matmul %194, %6, %cst_48 {dimension_numbers = #tpu.dot_dimension_numbers<[1], [0], [0], [1], [0, 0, 1, 1], [], []>, precision = #tpu.contract_precision<fp32>} : vector<8x32xf32>, vector<32x2xf32>, vector<8x2xf32> -> vector<8x2xf32>
    %196 = vector.broadcast %7 : vector<1x2xf32> to vector<8x2xf32>
    %197 = arith.addf %195, %196 : vector<8x2xf32>
    %cst_49 = arith.constant dense<0.000000e+00> : vector<8x128xf32>
    %198 = tpu.matmul %194, %3, %cst_49 {dimension_numbers = #tpu.dot_dimension_numbers<[1], [0], [0], [1], [0, 0, 1, 1], [], []>, precision = #tpu.contract_precision<fp32>} : vector<8x32xf32>, vector<32x128xf32>, vector<8x128xf32> -> vector<8x128xf32>
    %199 = vector.broadcast %5 : vector<1x128xf32> to vector<8x128xf32>
    %200 = arith.addf %198, %199 : vector<8x128xf32>
    %201 = vector.extract_strided_slice %200 {offsets = [0, 0], sizes = [8, 32], strides = [1, 1]} : vector<8x128xf32> to vector<8x32xf32>
    %202 = arith.negf %201 : vector<8x32xf32>
    %203 = math.exp %202 : vector<8x32xf32>
    %cst_50 = arith.constant 1.000000e+00 : f32
    %204 = vector.broadcast %cst_50 : f32 to vector<8x32xf32>
    %205 = arith.addf %204, %203 : vector<8x32xf32>
    %206 = arith.divf %204, %205 : vector<8x32xf32>
    %207 = vector.extract_strided_slice %200 {offsets = [0, 32], sizes = [8, 32], strides = [1, 1]} : vector<8x128xf32> to vector<8x32xf32>
    %208 = arith.negf %207 : vector<8x32xf32>
    %209 = math.exp %208 : vector<8x32xf32>
    %cst_51 = arith.constant 1.000000e+00 : f32
    %210 = vector.broadcast %cst_51 : f32 to vector<8x32xf32>
    %211 = arith.addf %210, %209 : vector<8x32xf32>
    %212 = arith.divf %210, %211 : vector<8x32xf32>
    %213 = vector.extract_strided_slice %200 {offsets = [0, 64], sizes = [8, 32], strides = [1, 1]} : vector<8x128xf32> to vector<8x32xf32>
    %214 = math.tanh %213 : vector<8x32xf32>
    %215 = vector.extract_strided_slice %200 {offsets = [0, 96], sizes = [8, 32], strides = [1, 1]} : vector<8x128xf32> to vector<8x32xf32>
    %216 = arith.negf %215 : vector<8x32xf32>
    %217 = math.exp %216 : vector<8x32xf32>
    %cst_52 = arith.constant 1.000000e+00 : f32
    %218 = vector.broadcast %cst_52 : f32 to vector<8x32xf32>
    %219 = arith.addf %218, %217 : vector<8x32xf32>
    %220 = arith.divf %218, %219 : vector<8x32xf32>
    %221 = arith.mulf %212, %192 : vector<8x32xf32>
    %222 = arith.mulf %206, %214 : vector<8x32xf32>
    %223 = arith.addf %221, %222 : vector<8x32xf32>
    %224 = math.tanh %223 : vector<8x32xf32>
    %225 = arith.mulf %220, %224 : vector<8x32xf32>
    %cst_53 = arith.constant dense<0.000000e+00> : vector<8x2xf32>
    %226 = tpu.matmul %225, %6, %cst_53 {dimension_numbers = #tpu.dot_dimension_numbers<[1], [0], [0], [1], [0, 0, 1, 1], [], []>, precision = #tpu.contract_precision<fp32>} : vector<8x32xf32>, vector<32x2xf32>, vector<8x2xf32> -> vector<8x2xf32>
    %227 = vector.broadcast %7 : vector<1x2xf32> to vector<8x2xf32>
    %228 = arith.addf %226, %227 : vector<8x2xf32>
    %cst_54 = arith.constant dense<0.000000e+00> : vector<8x128xf32>
    %229 = tpu.matmul %225, %3, %cst_54 {dimension_numbers = #tpu.dot_dimension_numbers<[1], [0], [0], [1], [0, 0, 1, 1], [], []>, precision = #tpu.contract_precision<fp32>} : vector<8x32xf32>, vector<32x128xf32>, vector<8x128xf32> -> vector<8x128xf32>
    %230 = vector.broadcast %5 : vector<1x128xf32> to vector<8x128xf32>
    %231 = arith.addf %229, %230 : vector<8x128xf32>
    %232 = vector.extract_strided_slice %231 {offsets = [0, 0], sizes = [8, 32], strides = [1, 1]} : vector<8x128xf32> to vector<8x32xf32>
    %233 = arith.negf %232 : vector<8x32xf32>
    %234 = math.exp %233 : vector<8x32xf32>
    %cst_55 = arith.constant 1.000000e+00 : f32
    %235 = vector.broadcast %cst_55 : f32 to vector<8x32xf32>
    %236 = arith.addf %235, %234 : vector<8x32xf32>
    %237 = arith.divf %235, %236 : vector<8x32xf32>
    %238 = vector.extract_strided_slice %231 {offsets = [0, 32], sizes = [8, 32], strides = [1, 1]} : vector<8x128xf32> to vector<8x32xf32>
    %239 = arith.negf %238 : vector<8x32xf32>
    %240 = math.exp %239 : vector<8x32xf32>
    %cst_56 = arith.constant 1.000000e+00 : f32
    %241 = vector.broadcast %cst_56 : f32 to vector<8x32xf32>
    %242 = arith.addf %241, %240 : vector<8x32xf32>
    %243 = arith.divf %241, %242 : vector<8x32xf32>
    %244 = vector.extract_strided_slice %231 {offsets = [0, 64], sizes = [8, 32], strides = [1, 1]} : vector<8x128xf32> to vector<8x32xf32>
    %245 = math.tanh %244 : vector<8x32xf32>
    %246 = vector.extract_strided_slice %231 {offsets = [0, 96], sizes = [8, 32], strides = [1, 1]} : vector<8x128xf32> to vector<8x32xf32>
    %247 = arith.negf %246 : vector<8x32xf32>
    %248 = math.exp %247 : vector<8x32xf32>
    %cst_57 = arith.constant 1.000000e+00 : f32
    %249 = vector.broadcast %cst_57 : f32 to vector<8x32xf32>
    %250 = arith.addf %249, %248 : vector<8x32xf32>
    %251 = arith.divf %249, %250 : vector<8x32xf32>
    %252 = arith.mulf %243, %223 : vector<8x32xf32>
    %253 = arith.mulf %237, %245 : vector<8x32xf32>
    %254 = arith.addf %252, %253 : vector<8x32xf32>
    %255 = math.tanh %254 : vector<8x32xf32>
    %256 = arith.mulf %251, %255 : vector<8x32xf32>
    %cst_58 = arith.constant dense<0.000000e+00> : vector<8x2xf32>
    %257 = tpu.matmul %256, %6, %cst_58 {dimension_numbers = #tpu.dot_dimension_numbers<[1], [0], [0], [1], [0, 0, 1, 1], [], []>, precision = #tpu.contract_precision<fp32>} : vector<8x32xf32>, vector<32x2xf32>, vector<8x2xf32> -> vector<8x2xf32>
    %258 = vector.broadcast %7 : vector<1x2xf32> to vector<8x2xf32>
    %259 = arith.addf %257, %258 : vector<8x2xf32>
    %260 = tpu.concatenate %42, %73, %104, %135, %166, %197, %228, %259 in 1 : vector<8x2xf32>, vector<8x2xf32>, vector<8x2xf32>, vector<8x2xf32>, vector<8x2xf32>, vector<8x2xf32>, vector<8x2xf32>, vector<8x2xf32> -> vector<8x16xf32>
    %c0_59 = arith.constant 0 : index
    %c0_60 = arith.constant 0 : index
    %261 = vector.load %arg11[%c0_59, %c0_60] : memref<8x16xf32, #tpu.memory_space<vmem>>, vector<8x16xf32>
    tpu.vector_store %arg11[%c0_59, %c0_60], %260 {strides = array<i32>} : memref<8x16xf32, #tpu.memory_space<vmem>>, vector<8x16xf32>,
    return
  }
  func.func @transform_0(%arg0: i32) -> (i32, i32) {
    %c0_i32 = arith.constant 0 : i32
    %c0_i32_0 = arith.constant 0 : i32
    %c0_i32_1 = arith.constant 0 : i32
    return %c0_i32, %c0_i32_0 : i32, i32
  }
  func.func @transform_1(%arg0: i32) -> (i32, i32) {
    %c0_i32 = arith.constant 0 : i32
    %c0_i32_0 = arith.constant 0 : i32
    %c0_i32_1 = arith.constant 0 : i32
    return %c0_i32, %c0_i32_0 : i32, i32
  }
  func.func @transform_2(%arg0: i32) -> (i32, i32) {
    %c0_i32 = arith.constant 0 : i32
    %c0_i32_0 = arith.constant 0 : i32
    %c0_i32_1 = arith.constant 0 : i32
    return %c0_i32, %c0_i32_0 : i32, i32
  }
  func.func @transform_3(%arg0: i32) -> (i32, i32) {
    %c0_i32 = arith.constant 0 : i32
    %c0_i32_0 = arith.constant 0 : i32
    %c0_i32_1 = arith.constant 0 : i32
    return %c0_i32, %c0_i32_0 : i32, i32
  }
  func.func @transform_4(%arg0: i32) -> (i32, i32) {
    %c0_i32 = arith.constant 0 : i32
    %c0_i32_0 = arith.constant 0 : i32
    %c0_i32_1 = arith.constant 0 : i32
    return %c0_i32, %c0_i32_0 : i32, i32
  }
  func.func @transform_5(%arg0: i32) -> (i32, i32) {
    %c0_i32 = arith.constant 0 : i32
    %c0_i32_0 = arith.constant 0 : i32
    %c0_i32_1 = arith.constant 0 : i32
    return %c0_i32, %c0_i32_0 : i32, i32
  }
  func.func @transform_6(%arg0: i32) -> (i32, i32) {
    %c0_i32 = arith.constant 0 : i32
    %c0_i32_0 = arith.constant 0 : i32
    %c0_i32_1 = arith.constant 0 : i32
    return %c0_i32, %c0_i32_0 : i32, i32
  }
  func.func @transform_7(%arg0: i32) -> (i32, i32) {
    %c0_i32 = arith.constant 0 : i32
    %c0_i32_0 = arith.constant 0 : i32
    %c0_i32_1 = arith.constant 0 : i32
    return %c0_i32, %c0_i32_0 : i32, i32
  }
  func.func @transform_8(%arg0: i32) -> (i32, i32) {
    %c0_i32 = arith.constant 0 : i32
    %c0_i32_0 = arith.constant 0 : i32
    %c0_i32_1 = arith.constant 0 : i32
    return %c0_i32, %c0_i32_0 : i32, i32
  }
  func.func @transform_9(%arg0: i32) -> (i32, i32) {
    %c0_i32 = arith.constant 0 : i32
    %c0_i32_0 = arith.constant 0 : i32
    %c0_i32_1 = arith.constant 0 : i32
    return %c0_i32, %c0_i32_0 : i32, i32
  }
  func.func @transform_10(%arg0: i32) -> (i32, i32) {
    %c0_i32 = arith.constant 0 : i32
    %c0_i32_0 = arith.constant 0 : i32
    %c0_i32_1 = arith.constant 0 : i32
    return %c0_i32, %c0_i32_0 : i32, i32
  }
}

</mosaic_0001>

<bundles_post_ra>
// kernel: tpu_custom_call.1
= control target key start
LH: loop header
LB: loop body
LE: loop exit
PB: predicated region body
PF: predicated region fallthrough
CT: control target
= control target key end

     0   :  { %15 = vsyncpa [#allocation3], 0  ;;  %s12052_s0 = inlined_call_operand.vmem [shape: f32[8,2], index: 0, kind: input, shape index: {}]   ;;  %s12053_s1 = inlined_call_operand.vmem [shape: f32[8,32], index: 1, kind: input, shape index: {}]   ;;  %s12054_s2 = inlined_call_operand.vmem [shape: f32[8,32], index: 2, kind: input, shape index: {}]   ;;  %s12055_s3 = inlined_call_operand.vmem [shape: f32[2,128], index: 3, kind: input, shape index: {}]   ;;  %s12056_s4 = inlined_call_operand.vmem [shape: f32[32,128], index: 4, kind: input, shape index: {}]   ;;  %s12057_s5 = inlined_call_operand.hbm [shape: f32[32,128], index: 5, kind: input, shape index: {}]   ;;  %s12058_s6 = inlined_call_operand.vmem [shape: f32[1,128], index: 6, kind: input, shape index: {}]   ;;  %s12059_s7 = inlined_call_operand.vmem [shape: f32[1,128], index: 7, kind: input, shape index: {}]   ;;  %s12060_s8 = inlined_call_operand.vmem [shape: f32[32,2], index: 8, kind: input, shape index: {}]   ;;  %s12061_s9 = inlined_call_operand.vmem [shape: f32[1,2], index: 9, kind: input, shape index: {}]   ;;  %s12062_s10 = inlined_call_operand.hbm [shape: f32[8,16], index: 10, kind: output, shape index: {}]  }
   0x1   :  { %16 = vsyncpa [#allocation4], 0  ;;  %s11058_s13 = smov [#allocation2]   ;;  %s11010_s17 = scalar_lea.hbm %s12057_s5, 512 }
   0x2   :  { %s32_s14 = sshll.u32 %s11058_s13, 4  ;;  %p11011_p0 = scmp.ne.s32.totalorder %s12057_s5, %s11010_s17  ;;  %s33_s14 = int_to_ptr.vmem [resolvable:$true] %s32_s14 }
   0x3   :  { %p11014_p1 = scmp.lt.u32.totalorder %s11010_s17, %s12057_s5 }
   0x5   :  { %p11016_p2 = pnand %p11014_p1, %p11011_p0 }
   0x7   :  { %11019 = shalt.err (!%p11016_p2)
}
   0x8   :  { %s11020_s22 = scalar_lea.vmem %s33_s14, 512  ;;  %p11025_p4 = scmp.lt.s32.totalorder %s33_s14, %s33_s14 }
   0x9   :  { %p11021_p3 = scmp.ne.s32.totalorder %s33_s14, %s11020_s22  ;;  %p11026_p5 = scmp.lt.s32.totalorder %s11020_s22, %s11020_s22 }
   0xb   :  { %p11027_p6 = por %p11026_p5, %p11025_p4 }
   0xd   :  { %p11028_p7 = pnand %p11027_p6, %p11021_p3 }
   0xf   :  { %11031 = shalt.err (!%p11028_p7)
}
  0x10   :  { %s11059_s23 = smov 128   ;;  %s11060_s24 = smov 8  }
  0x11   :  { %38 = dma.hbm_to_vmem [thread:$0]  %s12057_s5, 512, %s33_s14, [#allocation3], %s11059_s23, %s11059_s23, %s11060_s24  }
  0x12   :  { %11054 = dma.done.wait [#allocation3], 512  }
  0x13   :  { %11055 = vsyncadd [#allocation3], 4294966784  ;;  %v11061_v0 = vmov 0.0|0.0   ;;  %vm11062_vm0 = vmmov 0   ;;  %v11063_v1 = vmov 0.0   ;;  %vm69_vm1 = vcmask 261120  }
  0x14   :  { %10189 = vmatprep.subr.bf16.mxu1 %v11061_v0  ;;  %9111 = vmatprep.mubr.msk.f32.mxu1 %vm11062_vm0, %v11063_v1  ;;  %v52_v2 = vld [vmem:[%s12056_s4] sm:$0xff]  ;;  %v53_v3 = vld [vmem:[%s12056_s4 + $0x8] sm:$0xff]  ;;  %v54_v4 = vld [vmem:[%s12056_s4 + $0x10] sm:$0xff]  ;;  %vm562_vm2 = vcmask 1041408   ;;  %vm558_vm3 = vcmask 15360   ;;  %s11065_s21 = smov 32  }
  0x15   :  { %9169 = vmatprep.subr.mxu0 %v11063_v1  ;;  %9171 = vmatprep.mubr.msk.f32.mxu0 %vm11062_vm0, %v11063_v1  ;;  %v74_v5 = vand.u32 4294901760, %v52_v2  ;;  %v77_v6 = vand.u32 4294901760, %v53_v3  ;;  %v55_v7 = vld [vmem:[%s12056_s4 + $0x18] sm:$0xff]  ;;  %v80_v8 = vand.u32 4294901760, %v54_v4  ;;  %v50_v9 = vld [vmem:[%s12053_s1] sm:$0xff]  ;;  %s11066_s12 = smov 2  }
  0x16   :  { %v83_v10 = vand.u32 4294901760, %v55_v7  ;;  %v71_v11 = vsel %vm69_vm1, %v50_v9, 0  ;;  %v68_v12 = vld [vmem:[%s12055_s3] sm:$0x3]  ;;  %s11064_s3 = smov 64   ;;  %s11067_s13 = smov 6  }
  0x17   :  { %v11166_v13 = vpack.c.bf16 %v77_v6, %v74_v5  ;;  %v11168_v14 = vsub.f32 %v52_v2, %v74_v5  ;;  %v11170_v15 = vsub.f32 %v53_v3, %v77_v6  ;;  %v11172_v16 = vsub.f32 %v54_v4, %v80_v8  ;;  %v67_v17 = vld [vmem:[%s12052_s0] sm:$0xff]  ;;  %s11068_s14 = smov 10   ;;  %s11070_s15 = smov 12  }
  0x18   :  { %v11177_v18 = vsub.f32 %v55_v7, %v83_v10  ;;  %v11179_v19 = vand.u32 4294901760, %v71_v11  ;;  %v564_v20 = vsel %vm562_vm2, %v68_v12, 0  ;;  %v11182_v21 = vpack.c.bf16 %v83_v10, %v80_v8  ;;  %s11072_s16 = smov [#allocation5]  }
  0x19   :  { %10191 = vmatpush3.bf16.msra.mxu1 %v11166_v13  ;;  %v155_v22 = vand.u32 4294901760, %v11168_v14  ;;  %v162_v23 = vand.u32 4294901760, %v11170_v15  ;;  %v169_v24 = vand.u32 4294901760, %v11172_v16  ;;  %v11190_v27 = vand.u32 4294901760, %v564_v20  ;;  %s8591_s17 = sshll.u32 %s11072_s16, 4  ;;  %s8592_s17 = int_to_ptr.vmem [resolvable:$true] %s8591_s17 }
  0x1a   :  { %10192 = vmatprep.subr.bf16.mxu1 %v11061_v0  ;;  %v143_v25 = vsub.f32 %v71_v11, %v11179_v19  ;;  %v176_v26 = vand.u32 4294901760, %v11177_v18  ;;  %v560_v28 = vsel %vm558_vm3, %v67_v17, 0  ;;  %v10202_v48 = vpack.c.bf16 %v11170_v15, %v11168_v14  ;;  %s11032_s4 = scalar_lea.vmem %s8592_s17, 128  ;;  %p11037_p9 = scmp.lt.s32.totalorder %s8592_s17, %s8592_s17 }
  0x1b   :  { %v156_v29 = vsub.f32 %v11168_v14, %v155_v22  ;;  %v163_v30 = vsub.f32 %v11170_v15, %v162_v23  ;;  %v170_v31 = vsub.f32 %v11172_v16, %v169_v24  ;;  %9170 = vmatpush3.msra.mxu0 %v11190_v27  ;;  %v11201_v36 = vand.u32 4294901760, %v560_v28  ;;  %p11033_p8 = scmp.ne.s32.totalorder %s8592_s17, %s11032_s4  ;;  %p11038_p10 = scmp.lt.s32.totalorder %s11032_s4, %s11032_s4 }
  0x1c   :  { %v144_v32 = vand.u32 4294901760, %v143_v25  ;;  %v177_v33 = vsub.f32 %v11177_v18, %v176_v26  ;;  %9179 = vmatprep.subr.mxu0 %v11063_v1  ;;  %v644_v47 = vsub.f32 %v564_v20, %v11190_v27  ;;  %v10205_v49 = vpack.c.bf16 %v11177_v18, %v11172_v16 }
  0x1d   :  { %10194 = vmatpush3.bf16.msra.mxu1 %v11182_v21  ;;  %v157_v34 = vand.u32 4294901760, %v156_v29  ;;  %v164_v35 = vand.u32 4294901760, %v163_v30  ;;  %v171_v39 = vand.u32 4294901760, %v170_v31  ;;  %v633_v41 = vsub.f32 %v560_v28, %v11201_v36  ;;  %v51_v31 = vld [vmem:[%s12054_s2] sm:$0xff]  ;;  %p11039_p11 = por %p11038_p10, %p11037_p9 }
  0x1e   :  { %v145_v37 = vsub.f32 %v143_v25, %v144_v32  ;;  %10195 = vmatprep.subr.bf16.mxu1 %v11061_v0  ;;  %v178_v40 = vand.u32 4294901760, %v177_v33  ;;  %v645_v50 = vand.u32 4294901760, %v644_v47  ;;  %v10214_v51 = vpack.c.bf16 %v162_v23, %v155_v22 }
  0x1f   :  { %v10196_v38 = vpack.c.bf16 %v164_v35, %v157_v34  ;;  %v634_v43 = vand.u32 4294901760, %v633_v41  ;;  %v10217_v52 = vpack.c.bf16 %v176_v26, %v169_v24  ;;  %vm8571_vm4 = vcmask 31744   ;;  %p11040_p12 = pnand %p11039_p11, %p11033_p8 }
  0x20   :  { %v146_v42 = vand.u32 4294901760, %v145_v37  ;;  %v10199_v44 = vpack.c.bf16 %v178_v40, %v171_v39  ;;  %v646_v53 = vsub.f32 %v644_v47, %v645_v50  ;;  %vm8573_vm5 = vcmask 48128  }
  0x21   :  { %v635_v45 = vsub.f32 %v633_v41, %v634_v43  ;;  %vm8575_vm6 = vcmask 64512   ;;  %vm8577_vm7 = vcmask 80896   ;;  %vm8579_vm8 = vcmask 97280  }
  0x22   :  { %9112 = vmatmul.mubr.f32.vlgmr.msra.gmra.mrb[0].mxu1 %v146_v42  ;;  %v647_v54 = vand.u32 4294901760, %v646_v53  ;;  %vm8581_vm9 = vcmask 113664   ;;  %vm8583_vm10 = vcmask 130048  }
  0x23   :  { %10197 = vmatpush3.bf16.msra.mxu1 %v10196_v38  ;;  %9122 = vmatprep.mubr.msk.f32.mxu1 %vm11062_vm0, %v11063_v1  ;;  %v636_v46 = vand.u32 4294901760, %v635_v45  ;;  %v56_v45 = vld [vmem:[#allocation2] sm:$0xff] }
  0x24   :  { %10198 = vmatprep.subr.bf16.mxu1 %v11061_v0 }
  0x25   :  { %9172 = vmatmul.mubr.f32.vlgmr.msra.gmra.mrb[0].mxu0 %v636_v46 }
  0x26   :  { %9180 = vmatpush3.msra.mxu0 %v644_v47  ;;  %9181 = vmatprep.mubr.msk.f32.mxu0 %vm11062_vm0, %v11063_v1 }
  0x27   :  { %10200 = vmatpush3.bf16.msra.mxu1 %v10199_v44  ;;  %9189 = vmatprep.subr.mxu0 %v11063_v1  ;;  %v63_v44 = vld [vmem:[%s12060_s8 + $0x8] sm:$0xff] }
  0x28   :  { %10201 = vmatprep.subr.bf16.mxu1 %v11061_v0  ;;  %v1062_v47 = vand.u32 4294901760, %v63_v44 }
  0x29   :  { %9182 = vmatmul.mubr.f32.vlgmr.msra.gmra.mrb[2].mxu0 %v633_v41 }
  0x2a   :  { %9123 = vmatmul.mubr.f32.vlgmr.msra.gmra.mrb[2].mxu1 %v11179_v19  ;;  %9190 = vmatpush3.msra.mxu0 %v645_v50  ;;  %v1146_v53 = vsub.f32 %v63_v44, %v1062_v47 }
  0x2b   :  { %10203 = vmatpush3.bf16.msra.mxu1 %v10202_v48  ;;  %9133 = vmatprep.mubr.msk.f32.mxu1 %vm11062_vm0, %v11063_v1  ;;  %v57_v48 = vld [vmem:[#allocation2 + $0x8] sm:$0xff] }
  0x2c   :  { %10204 = vmatprep.subr.bf16.mxu1 %v11061_v0  ;;  %9191 = vmatprep.mubr.msk.f32.mxu0 %vm11062_vm0, %v11063_v1  ;;  %v1553_v50 = vand.u32 4294901760, %v57_v48 }
  0x2d   :  { %10225 = vmatprep.subr.bf16.mxu0 %v11061_v0  ;;  %9192 = vmatmul.mubr.f32.vlgmr.msra.gmra.mrb[4].mxu0 %v11201_v36 }
  0x2e   :  { %9207 = vmatprep.mubr.msk.f32.mxu0 %vm11062_vm0, %v11063_v1 }
  0x2f   :  { %10206 = vmatpush3.bf16.msra.mxu1 %v10205_v49  ;;  %v1550_v49 = vand.u32 4294901760, %v56_v45 }
  0x30   :  { %10207 = vmatprep.subr.bf16.mxu1 %v11061_v0 }
  0x32   :  { %9134 = vmatmul.mubr.f32.vlgmr.msra.gmra.mrb[4].mxu1 %v143_v25  ;;  %v8600_v25 = vld [vmem:[%s12058_s6] ss:$0 sm:$0xff] }
  0x33   :  { %10209 = vmatpush3.bf16.msra.mxu1 %v11166_v13  ;;  %9144 = vmatprep.mubr.msk.f32.mxu1 %vm11062_vm0, %v11063_v1 }
  0x34   :  { %10210 = vmatprep.subr.bf16.mxu1 %v11061_v0 }
  0x37   :  { %10212 = vmatpush3.bf16.msra.mxu1 %v11182_v21 }
  0x38   :  { %10213 = vmatprep.subr.bf16.mxu1 %v11061_v0 }
  0x3a   :  { %9145 = vmatmul.mubr.f32.vlgmr.msra.gmra.mrb[6].mxu1 %v144_v32 }
  0x3b   :  { %10215 = vmatpush3.bf16.msra.mxu1 %v10214_v51  ;;  %9155 = vmatprep.mubr.msk.f32.mxu1 %vm11062_vm0, %v11063_v1 }
  0x3c   :  { %10216 = vmatprep.subr.bf16.mxu1 %v11061_v0 }
  0x3f   :  { %10218 = vmatpush3.bf16.msra.mxu1 %v10217_v52 }
  0x40   :  { %10219 = vmatprep.subr.bf16.mxu1 %v11061_v0 }
  0x42   :  { %9156 = vmatmul.mubr.f32.vlgmr.msra.gmra.mrb[8].mxu1 %v11179_v19 }
  0x43   :  { %10221 = vmatpush3.bf16.msra.mxu1 %v11166_v13  ;;  %9166 = vmatprep.mubr.msk.f32.mxu1 %vm11062_vm0, %v11063_v1 }
  0x44   :  { %10222 = vmatprep.subr.bf16.mxu1 %v11061_v0 }
  0x47   :  { %10224 = vmatpush3.bf16.msra.mxu1 %v11182_v21 }
  0x48   :  { %9174 = vmatprep.subr.mxu1 %v11063_v1 }
  0x4a   :  { %9167 = vmatmul.mubr.f32.vlgmr.msra.gmra.mrb[10].mxu1 %v11179_v19 }
  0x4b   :  { %9175 = vmatpush3.msra.mxu1 %v647_v54  ;;  %9176 = vmatprep.mubr.msk.f32.mxu1 %vm11062_vm0, %v11063_v1  ;;  %v1630_v54 = vsub.f32 %v56_v45, %v1550_v49 }
  0x4c   :  { %9184 = vmatprep.subr.mxu1 %v11063_v1 }
  0x4e   :  { %9177 = vmatmul.mubr.f32.vlgmr.msra.gmra.mrb[12].mxu1 %v11201_v36 }
  0x4f   :  { %9185 = vmatpush3.msra.mxu1 %v11190_v27  ;;  %9186 = vmatprep.mubr.msk.f32.mxu1 %vm11062_vm0, %v11063_v1 }
  0x50   :  { %9194 = vmatprep.subr.mxu1 %v11063_v1 }
  0x52   :  { %9187 = vmatmul.mubr.f32.vlgmr.msra.gmra.mrb[14].mxu1 %v634_v43  ;;  %v62_v43 = vld [vmem:[%s12060_s8] sm:$0xff] }
  0x53   :  { %9195 = vmatpush3.msra.mxu1 %v11190_v27  ;;  %9196 = vmatprep.mubr.msk.f32.mxu1 %vm11062_vm0, %v11063_v1  ;;  %v1059_v46 = vand.u32 4294901760, %v62_v43 }
  0x54   :  { %10261 = vmatprep.subr.bf16.mxu1 %v11061_v0 }
  0x55   :  { %v11287_v51 = vpack.c.bf16 %v1062_v47, %v1059_v46  ;;  %v11289_v52 = vsub.f32 %v62_v43, %v1059_v46 }
  0x56   :  { %9197 = vmatmul.mubr.f32.vlgmr.msra.gmra.mrb[16].mxu1 %v11201_v36 }
  0x57   :  { %9273 = vmatprep.mubr.msk.f32.mxu1 %vm11062_vm0, %v11063_v1  ;;  %10227 = vmatpush3.bf16.msra.mxu0 %v11287_v51 }
  0x58   :  { %10228 = vmatprep.subr.bf16.mxu0 %v11061_v0 }
  0xf5   :  { %v148_v55 = vpop.f32.mrb[0].mxu1 }
  0xf6   :  { %v9113_v56 = vpop.f32.mrb[1].mxu1 }
  0xf7   :  { %v64_v56 = vld [vmem:[%s12060_s8 + $0x10] sm:$0xff] }
  0xf8   :  { %v638_v57 = vpop.f32.mrb[0].mxu0 }
  0xf9   :  { %v9173_v58 = vpop.f32.mrb[1].mxu0 }
  0xfa   :  { %v58_v58 = vld [vmem:[#allocation2 + $0x10] sm:$0xff] }
  0xfc   :  { %v788_v62 = vpop.f32.mrb[2].mxu0 }
  0xfd   :  { %v239_v59 = vpop.f32.mrb[2].mxu1  ;;  %v9183_v63 = vpop.f32.mrb[3].mxu0 }
  0xfe   :  { %v240_v60 = vadd.f32 %v239_v59, %v148_v55  ;;  %v9124_v61 = vpop.f32.mrb[3].mxu1  ;;  %v11291_v55 = vpack.c.bf16 %v1553_v50, %v1550_v49  ;;  %v1637_v59 = vsub.f32 %v57_v48, %v1553_v50  ;;  %v1556_v63 = vand.u32 4294901760, %v58_v58 }
 0x100   :  { %v936_v2 = vpop.f32.mrb[4].mxu0  ;;  %10263 = vmatpush3.bf16.msra.mxu1 %v11291_v55 }
 0x101   :  { %v9193_v3 = vpop.f32.mrb[5].mxu0  ;;  %10264 = vmatprep.subr.bf16.mxu1 %v11061_v0 }
 0x105   :  { %v319_v4 = vpop.f32.mrb[4].mxu1 }
 0x106   :  { %v320_v5 = vadd.f32 %v319_v4, %v240_v60  ;;  %v9135_v6 = vpop.f32.mrb[5].mxu1  ;;  %v1065_v60 = vand.u32 4294901760, %v64_v56  ;;  %v1147_v4 = vand.u32 4294901760, %v1146_v53 }
 0x107   :  { %v1638_v6 = vand.u32 4294901760, %v1637_v59 }
 0x10d   :  { %v396_v7 = vpop.f32.mrb[6].mxu1 }
 0x10e   :  { %v397_v8 = vadd.f32 %v396_v7, %v320_v5  ;;  %v9146_v9 = vpop.f32.mrb[7].mxu1  ;;  %v1631_v5 = vand.u32 4294901760, %v1630_v54 }
 0x10f   :  { %v1153_v9 = vsub.f32 %v64_v56, %v1065_v60 }
 0x110   :  { %v11334_v45 = vpack.c.bf16 %v1638_v6, %v1631_v5 }
 0x115   :  { %v479_v10 = vpop.f32.mrb[8].mxu1 }
 0x116   :  { %v480_v11 = vadd.f32 %v479_v10, %v397_v8  ;;  %v9157_v12 = vpop.f32.mrb[9].mxu1 }
 0x117   :  { %v1148_v12 = vsub.f32 %v1146_v53, %v1147_v4 }
 0x11d   :  { %v554_v13 = vpop.f32.mrb[10].mxu1 }
 0x11e   :  { %v555_v14 = vadd.f32 %v554_v13, %v480_v11  ;;  %v9168_v15 = vpop.f32.mrb[11].mxu1  ;;  %v1632_v13 = vsub.f32 %v1630_v54, %v1631_v5 }
 0x120   :  { %v639_v16 = vadd.f32 %v638_v57, %v555_v14  ;;  %v65_v57 = vld [vmem:[%s12060_s8 + $0x18] sm:$0xff]  ;;  %v1639_v14 = vsub.f32 %v1637_v59, %v1638_v6 }
 0x121   :  { %v714_v17 = vpop.f32.mrb[12].mxu1  ;;  %v1068_v61 = vand.u32 4294901760, %v65_v57 }
 0x122   :  { %v715_v18 = vadd.f32 %v714_v17, %v639_v16  ;;  %v9178_v19 = vpop.f32.mrb[13].mxu1  ;;  %v1154_v16 = vand.u32 4294901760, %v1153_v9 }
 0x123   :  { %v11304_v7 = vpack.c.bf16 %v1068_v61, %v1065_v60  ;;  %v1160_v10 = vsub.f32 %v65_v57, %v1068_v61  ;;  %v1149_v19 = vand.u32 4294901760, %v1148_v12  ;;  %v11425_v57 = vld [vmem:[%s12059_s7] ss:$0 sm:$0xff] }
 0x124   :  { %v789_v20 = vadd.f32 %v788_v62, %v715_v18  ;;  %v59_v62 = vld [vmem:[#allocation2 + $0x18] sm:$0xff]  ;;  %v1644_v18 = vsub.f32 %v58_v58, %v1556_v63 }
 0x125   :  { %v862_v21 = vpop.f32.mrb[14].mxu1  ;;  %v1559_v3 = vand.u32 4294901760, %v59_v62  ;;  %10230 = vmatpush3.bf16.msra.mxu0 %v11304_v7  ;;  %v1161_v17 = vand.u32 4294901760, %v1160_v10 }
 0x126   :  { %v863_v22 = vadd.f32 %v862_v21, %v789_v20  ;;  %v9188_v23 = vpop.f32.mrb[15].mxu1  ;;  %10231 = vmatprep.subr.bf16.mxu0 %v11061_v0  ;;  %v1633_v20 = vand.u32 4294901760, %v1632_v13  ;;  %v1640_v21 = vand.u32 4294901760, %v1639_v14 }
 0x127   :  { %v11307_v11 = vpack.c.bf16 %v1559_v3, %v1556_v63  ;;  %v11336_v46 = vpack.c.bf16 %v1161_v17, %v1154_v16 }
 0x128   :  { %v937_v24 = vadd.f32 %v936_v2, %v863_v22  ;;  %v1140_v2 = vand.u32 4294901760, %v11289_v52  ;;  %v1651_v22 = vsub.f32 %v59_v62, %v1559_v3 }
 0x129   :  { %v1008_v26 = vpop.f32.mrb[16].mxu1  ;;  %10266 = vmatpush3.bf16.msra.mxu1 %v11307_v11 }
 0x12a   :  { %v1009_v27 = vadd.f32 %v1008_v26, %v937_v24  ;;  %v9198_v28 = vpop.f32.mrb[17].mxu1  ;;  %v1141_v8 = vsub.f32 %v11289_v52, %v1140_v2  ;;  %10267 = vmatprep.subr.bf16.mxu1 %v11061_v0  ;;  %v1155_v24 = vsub.f32 %v1153_v9, %v1154_v16  ;;  %v1645_v26 = vand.u32 4294901760, %v1644_v18 }
 0x12b   :  { %v11330_v43 = vpack.c.bf16 %v1651_v22, %v1644_v18  ;;  %v11332_v44 = vpack.c.bf16 %v1147_v4, %v1140_v2 }
 0x12c   :  { %v1018_v29 = vadd.f32 %v8600_v25, %v1009_v27  ;;  %v1142_v15 = vand.u32 4294901760, %v1141_v8  ;;  %v1162_v25 = vsub.f32 %v1160_v10, %v1161_v17 }
 0x12e   :  { %10945 = vtanh.f32 %v1018_v29  ;;  %v8601_v32 = vmul.f32 -1.442695, %v1018_v29  ;;  %v11314_v28 = vpack.c.bf16 %v1149_v19, %v1142_v15  ;;  %v11316_v29 = vpack.c.bf16 %v1640_v21, %v1633_v20 }
 0x130   :  { %10947 = vpow2.f32 %v8601_v32  ;;  %v1163_v32 = vand.u32 4294901760, %v1162_v25 }
 0x138   :  { %v10946_v30 = vpop.eup %10945 }
 0x139   :  { %1032 = vrot.lane.b32.xlu0 %v10946_v30, %s11064_s3  ;;  %v1652_v30 = vand.u32 4294901760, %v1651_v22 }
 0x13a   :  { %v10948_v33 = vpop.eup %10947 }
 0x13b   :  { %v1022_v34 = vadd.f32 1.0, %v10948_v33  ;;  %v1646_v33 = vsub.f32 %v1644_v18, %v1645_v26  ;;  %v11338_v47 = vpack.c.bf16 %v1652_v30, %v1645_v26 }
 0x13d   :  { %1027 = vrot.lane.b32.xlu0 %v51_v31, %s11065_s21  ;;  %10949 = vrcp.f32 %v1022_v34  ;;  %v1156_v31 = vand.u32 4294901760, %v1155_v24  ;;  %v1653_v34 = vsub.f32 %v1651_v22, %v1652_v30 }
 0x147   :  { %v11272_v35 = vpop.eup %10949 }
 0x1ab   :  { %v1033_v36 = vpop.permute.xlu0 %1032 }
 0x1ac   :  { %v1035_v37 = vmul.f32 %v11272_v35, %v1033_v36  ;;  %v11319_v36 = vpack.c.bf16 %v1163_v32, %v1156_v31 }
 0x1ae   :  { %1037 = vrot.lane.b32.xlu1 %v1035_v37, %s11065_s21  ;;  %v1647_v37 = vand.u32 4294901760, %v1646_v33 }
 0x1af   :  { %v1028_v38 = vpop.permute.xlu0 %1027 }
 0x1b0   :  { %v1030_v39 = vmul.f32 %v11272_v35, %v1028_v38  ;;  %v1654_v38 = vand.u32 4294901760, %v1653_v34 }
 0x220   :  { %v1038_v40 = vpop.permute.xlu1 %1037 }
 0x221   :  { %v11277_v41 = vadd.f32 %v1038_v40, %v1030_v39  ;;  %v11321_v39 = vpack.c.bf16 %v1654_v38, %v1647_v37  ;;  %v11324_v40 = vpack.c.bf16 %v1146_v53, %v11289_v52 }
 0x223   :  { %10951 = vtanh.f32 %v11277_v41 }
 0x22d   :  { %v10952_v42 = vpop.eup %10951 }
 0x22e   :  { %1043 = vrot.lane.b32.xlu1 %v10952_v42, %s11064_s3  ;;  %v11328_v42 = vpack.c.bf16 %v1160_v10, %v1153_v9 }
 0x2a0   :  { %v1044_v23 = vpop.permute.xlu1 %1043 }
 0x2a1   :  { %v1046_v27 = vmul.f32 %v11272_v35, %v1044_v23  ;;  %v11326_v35 = vpack.c.bf16 %v1637_v59, %v1630_v54 }
 0x2a3   :  { %1054 = vrot.lane.b32.xlu0 %v1046_v27, %s11065_s21 }
 0x315   :  { %v1055_v48 = vpop.permute.xlu0 %1054 }
 0x316   :  { %v1056_v49 = vsel %vm69_vm1, %v1055_v48, 0 }
 0x317   :  { %v11341_v50 = vand.u32 4294901760, %v1056_v49 }
 0x319   :  { %v1128_v52 = vsub.f32 %v1056_v49, %v11341_v50 }
 0x31b   :  { %v1129_v53 = vand.u32 4294901760, %v1128_v52 }
 0x31d   :  { %v1130_v54 = vsub.f32 %v1128_v52, %v1129_v53 }
 0x31f   :  { %v1131_v56 = vand.u32 4294901760, %v1130_v54 }
 0x321   :  { %9208 = vmatmul.mubr.f32.vlgmr.msra.gmra.mrb[6].mxu0 %v1131_v56  ;;  %9274 = vmatmul.mubr.f32.vlgmr.msra.gmra.mrb[18].mxu1 %v1131_v56 }
 0x322   :  { %10233 = vmatpush3.bf16.msra.mxu0 %v11314_v28  ;;  %10269 = vmatpush3.bf16.msra.mxu1 %v11316_v29 }
 0x323   :  { %10234 = vmatprep.subr.bf16.mxu0 %v11061_v0  ;;  %10270 = vmatprep.subr.bf16.mxu1 %v11061_v0 }
 0x324   :  { %9218 = vmatprep.mubr.msk.f32.mxu0 %vm11062_vm0, %v11063_v1  ;;  %9284 = vmatprep.mubr.msk.f32.mxu1 %vm11062_vm0, %v11063_v1 }
 0x326   :  { %10236 = vmatpush3.bf16.msra.mxu0 %v11319_v36  ;;  %10272 = vmatpush3.bf16.msra.mxu1 %v11321_v39 }
 0x327   :  { %10237 = vmatprep.subr.bf16.mxu0 %v11061_v0  ;;  %10273 = vmatprep.subr.bf16.mxu1 %v11061_v0 }
 0x329   :  { %9219 = vmatmul.mubr.f32.vlgmr.msra.gmra.mrb[6].mxu0 %v11341_v50  ;;  %9285 = vmatmul.mubr.f32.vlgmr.msra.gmra.mrb[18].mxu1 %v11341_v50 }
 0x32a   :  { %10239 = vmatpush3.bf16.msra.mxu0 %v11324_v40  ;;  %10275 = vmatpush3.bf16.msra.mxu1 %v11326_v35 }
 0x32b   :  { %10240 = vmatprep.subr.bf16.mxu0 %v11061_v0  ;;  %10276 = vmatprep.subr.bf16.mxu1 %v11061_v0 }
 0x32c   :  { %9229 = vmatprep.mubr.msk.f32.mxu0 %vm11062_vm0, %v11063_v1  ;;  %9295 = vmatprep.mubr.msk.f32.mxu1 %vm11062_vm0, %v11063_v1 }
 0x32e   :  { %10242 = vmatpush3.bf16.msra.mxu0 %v11328_v42  ;;  %10278 = vmatpush3.bf16.msra.mxu1 %v11330_v43 }
 0x32f   :  { %10243 = vmatprep.subr.bf16.mxu0 %v11061_v0  ;;  %10279 = vmatprep.subr.bf16.mxu1 %v11061_v0 }
 0x331   :  { %9230 = vmatmul.mubr.f32.vlgmr.msra.gmra.mrb[6].mxu0 %v1128_v52  ;;  %9296 = vmatmul.mubr.f32.vlgmr.msra.gmra.mrb[18].mxu1 %v1128_v52 }
 0x332   :  { %10245 = vmatpush3.bf16.msra.mxu0 %v11287_v51  ;;  %10281 = vmatpush3.bf16.msra.mxu1 %v11291_v55 }
 0x333   :  { %10246 = vmatprep.subr.bf16.mxu0 %v11061_v0  ;;  %10282 = vmatprep.subr.bf16.mxu1 %v11061_v0 }
 0x334   :  { %9240 = vmatprep.mubr.msk.f32.mxu0 %vm11062_vm0, %v11063_v1  ;;  %9306 = vmatprep.mubr.msk.f32.mxu1 %vm11062_vm0, %v11063_v1 }
 0x336   :  { %10248 = vmatpush3.bf16.msra.mxu0 %v11304_v7  ;;  %10284 = vmatpush3.bf16.msra.mxu1 %v11307_v11 }
 0x337   :  { %10249 = vmatprep.subr.bf16.mxu0 %v11061_v0  ;;  %10285 = vmatprep.subr.bf16.mxu1 %v11061_v0 }
 0x339   :  { %9241 = vmatmul.mubr.f32.vlgmr.msra.gmra.mrb[6].mxu0 %v1129_v53  ;;  %9307 = vmatmul.mubr.f32.vlgmr.msra.gmra.mrb[18].mxu1 %v1129_v53 }
 0x33a   :  { %10251 = vmatpush3.bf16.msra.mxu0 %v11332_v44  ;;  %10287 = vmatpush3.bf16.msra.mxu1 %v11334_v45 }
 0x33b   :  { %10252 = vmatprep.subr.bf16.mxu0 %v11061_v0  ;;  %10288 = vmatprep.subr.bf16.mxu1 %v11061_v0 }
 0x33c   :  { %9251 = vmatprep.mubr.msk.f32.mxu0 %vm11062_vm0, %v11063_v1  ;;  %9317 = vmatprep.mubr.msk.f32.mxu1 %vm11062_vm0, %v11063_v1 }
 0x33e   :  { %10254 = vmatpush3.bf16.msra.mxu0 %v11336_v46  ;;  %10290 = vmatpush3.bf16.msra.mxu1 %v11338_v47 }
 0x33f   :  { %10255 = vmatprep.subr.bf16.mxu0 %v11061_v0  ;;  %10291 = vmatprep.subr.bf16.mxu1 %v11061_v0 }
 0x341   :  { %9252 = vmatmul.mubr.f32.vlgmr.msra.gmra.mrb[6].mxu0 %v11341_v50  ;;  %9318 = vmatmul.mubr.f32.vlgmr.msra.gmra.mrb[18].mxu1 %v11341_v50 }
 0x342   :  { %10257 = vmatpush3.bf16.msra.mxu0 %v11287_v51  ;;  %10293 = vmatpush3.bf16.msra.mxu1 %v11291_v55 }
 0x343   :  { %10258 = vmatprep.subr.bf16.mxu0 %v11061_v0  ;;  %10294 = vmatprep.subr.bf16.mxu1 %v11061_v0 }
 0x344   :  { %9262 = vmatprep.mubr.msk.f32.mxu0 %vm11062_vm0, %v11063_v1  ;;  %9328 = vmatprep.mubr.msk.f32.mxu1 %vm11062_vm0, %v11063_v1 }
 0x346   :  { %10260 = vmatpush3.bf16.msra.mxu0 %v11304_v7  ;;  %10296 = vmatpush3.bf16.msra.mxu1 %v11307_v11 }
 0x347   :  { %10297 = vmatprep.subr.bf16.mxu0 %v11061_v0  ;;  %10333 = vmatprep.subr.bf16.mxu1 %v11061_v0 }
 0x349   :  { %9263 = vmatmul.mubr.f32.vlgmr.msra.gmra.mrb[6].mxu0 %v11341_v50  ;;  %9329 = vmatmul.mubr.f32.vlgmr.msra.gmra.mrb[18].mxu1 %v11341_v50 }
 0x34a   :  { %10299 = vmatpush3.bf16.msra.mxu0 %v11287_v51  ;;  %10335 = vmatpush3.bf16.msra.mxu1 %v11291_v55 }
 0x34b   :  { %10300 = vmatprep.subr.bf16.mxu0 %v11061_v0  ;;  %10336 = vmatprep.subr.bf16.mxu1 %v11061_v0 }
 0x34c   :  { %9339 = vmatprep.mubr.msk.f32.mxu0 %vm11062_vm0, %v11063_v1  ;;  %9405 = vmatprep.mubr.msk.f32.mxu1 %vm11062_vm0, %v11063_v1 }
 0x34e   :  { %10302 = vmatpush3.bf16.msra.mxu0 %v11304_v7  ;;  %10338 = vmatpush3.bf16.msra.mxu1 %v11307_v11 }
 0x34f   :  { %10303 = vmatprep.subr.bf16.mxu0 %v11061_v0  ;;  %10339 = vmatprep.subr.bf16.mxu1 %v11061_v0 }
 0x41c   :  { %v11427_v58 = vpop.f32.mrb[6].mxu0  ;;  %v2030_v59 = vpop.f32.mrb[18].mxu1 }
 0x41d   :  { %v10766_v60 = vadd.f32 %v11425_v57, %v2030_v59  ;;  %v9264_v61 = vpop.f32.mrb[7].mxu0  ;;  %v9330_v62 = vpop.f32.mrb[19].mxu1 }
 0x41f   :  { %10953 = vtanh.f32 %v10766_v60  ;;  %v8604_v2 = vmul.f32 -1.442695, %v10766_v60 }
 0x421   :  { %10955 = vpow2.f32 %v8604_v2 }
 0x429   :  { %v10954_v63 = vpop.eup %10953 }
 0x42a   :  { %2043 = vrot.lane.b32.xlu1 %v10954_v63, %s11064_s3 }
 0x42b   :  { %v10956_v3 = vpop.eup %10955 }
 0x42c   :  { %v2037_v4 = vadd.f32 1.0, %v10956_v3 }
 0x42e   :  { %10957 = vrcp.f32 %v2037_v4 }
 0x438   :  { %v10958_v5 = vpop.eup %10957 }
 0x439   :  { %v2041_v9 = vmul.f32 %v10958_v5, %v11277_v41 }
 0x49c   :  { %v2044_v6 = vpop.permute.xlu1 %2043 }
 0x49d   :  { %v2046_v8 = vmul.f32 %v10958_v5, %v2044_v6 }
 0x49f   :  { %2048 = vrot.lane.b32.xlu0 %v2046_v8, %s11065_s21 }
 0x511   :  { %v2049_v10 = vpop.permute.xlu0 %2048 }
 0x512   :  { %v11433_v12 = vadd.f32 %v2049_v10, %v2041_v9 }
 0x514   :  { %10959 = vtanh.f32 %v11433_v12 }
 0x51e   :  { %v10960_v13 = vpop.eup %10959 }
 0x51f   :  { %2054 = vrot.lane.b32.xlu1 %v10960_v13, %s11064_s3 }
 0x591   :  { %v2055_v14 = vpop.permute.xlu1 %2054 }
 0x592   :  { %v2057_v15 = vmul.f32 %v10958_v5, %v2055_v14 }
 0x594   :  { %2059 = vrot.lane.b32.xlu0 %v2057_v15, %s11065_s21 }
 0x606   :  { %v2060_v16 = vpop.permute.xlu0 %2059 }
 0x607   :  { %v2061_v17 = vsel %vm69_vm1, %v2060_v16, 0 }
 0x608   :  { %v11439_v18 = vand.u32 4294901760, %v2061_v17 }
 0x60a   :  { %v2133_v19 = vsub.f32 %v2061_v17, %v11439_v18 }
 0x60c   :  { %v2134_v41 = vand.u32 4294901760, %v2133_v19 }
 0x60e   :  { %v2135_v20 = vsub.f32 %v2133_v19, %v2134_v41 }
 0x610   :  { %v2136_v21 = vand.u32 4294901760, %v2135_v20 }
 0x612   :  { %9340 = vmatmul.mubr.f32.vlgmr.msra.gmra.mrb[8].mxu0 %v2136_v21  ;;  %9406 = vmatmul.mubr.f32.vlgmr.msra.gmra.mrb[20].mxu1 %v2136_v21 }
 0x613   :  { %10305 = vmatpush3.bf16.msra.mxu0 %v11314_v28  ;;  %10341 = vmatpush3.bf16.msra.mxu1 %v11316_v29 }
 0x614   :  { %10306 = vmatprep.subr.bf16.mxu0 %v11061_v0  ;;  %10342 = vmatprep.subr.bf16.mxu1 %v11061_v0 }
 0x615   :  { %9350 = vmatprep.mubr.msk.f32.mxu0 %vm11062_vm0, %v11063_v1  ;;  %9416 = vmatprep.mubr.msk.f32.mxu1 %vm11062_vm0, %v11063_v1 }
 0x617   :  { %10308 = vmatpush3.bf16.msra.mxu0 %v11319_v36  ;;  %10344 = vmatpush3.bf16.msra.mxu1 %v11321_v39 }
 0x618   :  { %10309 = vmatprep.subr.bf16.mxu0 %v11061_v0  ;;  %10345 = vmatprep.subr.bf16.mxu1 %v11061_v0 }
 0x61a   :  { %9351 = vmatmul.mubr.f32.vlgmr.msra.gmra.mrb[8].mxu0 %v11439_v18  ;;  %9417 = vmatmul.mubr.f32.vlgmr.msra.gmra.mrb[20].mxu1 %v11439_v18 }
 0x61b   :  { %10311 = vmatpush3.bf16.msra.mxu0 %v11324_v40  ;;  %10347 = vmatpush3.bf16.msra.mxu1 %v11326_v35 }
 0x61c   :  { %10312 = vmatprep.subr.bf16.mxu0 %v11061_v0  ;;  %10348 = vmatprep.subr.bf16.mxu1 %v11061_v0 }
 0x61d   :  { %9361 = vmatprep.mubr.msk.f32.mxu0 %vm11062_vm0, %v11063_v1  ;;  %9427 = vmatprep.mubr.msk.f32.mxu1 %vm11062_vm0, %v11063_v1 }
 0x61f   :  { %10314 = vmatpush3.bf16.msra.mxu0 %v11328_v42  ;;  %10350 = vmatpush3.bf16.msra.mxu1 %v11330_v43 }
 0x620   :  { %10315 = vmatprep.subr.bf16.mxu0 %v11061_v0  ;;  %10351 = vmatprep.subr.bf16.mxu1 %v11061_v0 }
 0x622   :  { %9362 = vmatmul.mubr.f32.vlgmr.msra.gmra.mrb[8].mxu0 %v2133_v19  ;;  %9428 = vmatmul.mubr.f32.vlgmr.msra.gmra.mrb[20].mxu1 %v2133_v19 }
 0x623   :  { %10317 = vmatpush3.bf16.msra.mxu0 %v11287_v51  ;;  %10353 = vmatpush3.bf16.msra.mxu1 %v11291_v55 }
 0x624   :  { %10318 = vmatprep.subr.bf16.mxu0 %v11061_v0  ;;  %10354 = vmatprep.subr.bf16.mxu1 %v11061_v0 }
 0x625   :  { %9372 = vmatprep.mubr.msk.f32.mxu0 %vm11062_vm0, %v11063_v1  ;;  %9438 = vmatprep.mubr.msk.f32.mxu1 %vm11062_vm0, %v11063_v1 }
 0x627   :  { %10320 = vmatpush3.bf16.msra.mxu0 %v11304_v7  ;;  %10356 = vmatpush3.bf16.msra.mxu1 %v11307_v11 }
 0x628   :  { %10321 = vmatprep.subr.bf16.mxu0 %v11061_v0  ;;  %10357 = vmatprep.subr.bf16.mxu1 %v11061_v0 }
 0x62a   :  { %9373 = vmatmul.mubr.f32.vlgmr.msra.gmra.mrb[8].mxu0 %v2134_v41  ;;  %9439 = vmatmul.mubr.f32.vlgmr.msra.gmra.mrb[20].mxu1 %v2134_v41 }
 0x62b   :  { %10323 = vmatpush3.bf16.msra.mxu0 %v11332_v44  ;;  %10359 = vmatpush3.bf16.msra.mxu1 %v11334_v45 }
 0x62c   :  { %10324 = vmatprep.subr.bf16.mxu0 %v11061_v0  ;;  %10360 = vmatprep.subr.bf16.mxu1 %v11061_v0 }
 0x62d   :  { %9383 = vmatprep.mubr.msk.f32.mxu0 %vm11062_vm0, %v11063_v1  ;;  %9449 = vmatprep.mubr.msk.f32.mxu1 %vm11062_vm0, %v11063_v1 }
 0x62f   :  { %10326 = vmatpush3.bf16.msra.mxu0 %v11336_v46  ;;  %10362 = vmatpush3.bf16.msra.mxu1 %v11338_v47 }
 0x630   :  { %10327 = vmatprep.subr.bf16.mxu0 %v11061_v0  ;;  %10363 = vmatprep.subr.bf16.mxu1 %v11061_v0 }
 0x632   :  { %9384 = vmatmul.mubr.f32.vlgmr.msra.gmra.mrb[8].mxu0 %v11439_v18  ;;  %9450 = vmatmul.mubr.f32.vlgmr.msra.gmra.mrb[20].mxu1 %v11439_v18 }
 0x633   :  { %10329 = vmatpush3.bf16.msra.mxu0 %v11287_v51  ;;  %10365 = vmatpush3.bf16.msra.mxu1 %v11291_v55 }
 0x634   :  { %10330 = vmatprep.subr.bf16.mxu0 %v11061_v0  ;;  %10366 = vmatprep.subr.bf16.mxu1 %v11061_v0 }
 0x635   :  { %9394 = vmatprep.mubr.msk.f32.mxu0 %vm11062_vm0, %v11063_v1  ;;  %9460 = vmatprep.mubr.msk.f32.mxu1 %vm11062_vm0, %v11063_v1 }
 0x637   :  { %10332 = vmatpush3.bf16.msra.mxu0 %v11304_v7  ;;  %10368 = vmatpush3.bf16.msra.mxu1 %v11307_v11 }
 0x638   :  { %10369 = vmatprep.subr.bf16.mxu0 %v11061_v0  ;;  %10405 = vmatprep.subr.bf16.mxu1 %v11061_v0 }
 0x63a   :  { %9395 = vmatmul.mubr.f32.vlgmr.msra.gmra.mrb[8].mxu0 %v11439_v18  ;;  %9461 = vmatmul.mubr.f32.vlgmr.msra.gmra.mrb[20].mxu1 %v11439_v18 }
 0x63b   :  { %10371 = vmatpush3.bf16.msra.mxu0 %v11287_v51  ;;  %10407 = vmatpush3.bf16.msra.mxu1 %v11291_v55 }
 0x63c   :  { %10372 = vmatprep.subr.bf16.mxu0 %v11061_v0  ;;  %10408 = vmatprep.subr.bf16.mxu1 %v11061_v0 }
 0x63d   :  { %9471 = vmatprep.mubr.msk.f32.mxu0 %vm11062_vm0, %v11063_v1  ;;  %9537 = vmatprep.mubr.msk.f32.mxu1 %vm11062_vm0, %v11063_v1 }
 0x63f   :  { %10374 = vmatpush3.bf16.msra.mxu0 %v11304_v7  ;;  %10410 = vmatpush3.bf16.msra.mxu1 %v11307_v11 }
 0x640   :  { %10375 = vmatprep.subr.bf16.mxu0 %v11061_v0  ;;  %10411 = vmatprep.subr.bf16.mxu1 %v11061_v0 }
 0x70d   :  { %v11520_v22 = vpop.f32.mrb[8].mxu0  ;;  %v3029_v23 = vpop.f32.mrb[20].mxu1 }
 0x70e   :  { %v10768_v24 = vadd.f32 %v11425_v57, %v3029_v23  ;;  %v9396_v25 = vpop.f32.mrb[9].mxu0  ;;  %v9462_v26 = vpop.f32.mrb[21].mxu1 }
 0x710   :  { %10961 = vtanh.f32 %v10768_v24  ;;  %v8605_v30 = vmul.f32 -1.442695, %v10768_v24 }
 0x712   :  { %10963 = vpow2.f32 %v8605_v30 }
 0x71a   :  { %v10962_v27 = vpop.eup %10961 }
 0x71b   :  { %3042 = vrot.lane.b32.xlu1 %v10962_v27, %s11064_s3 }
 0x71c   :  { %v10964_v31 = vpop.eup %10963 }
 0x71d   :  { %v3036_v32 = vadd.f32 1.0, %v10964_v31 }
 0x71f   :  { %10965 = vrcp.f32 %v3036_v32 }
 0x729   :  { %v10966_v33 = vpop.eup %10965 }
 0x72a   :  { %v3040_v38 = vmul.f32 %v10966_v33, %v11433_v12 }
 0x78d   :  { %v3043_v34 = vpop.permute.xlu1 %3042 }
 0x78e   :  { %v3045_v37 = vmul.f32 %v10966_v33, %v3043_v34 }
 0x790   :  { %3047 = vrot.lane.b32.xlu0 %v3045_v37, %s11065_s21 }
 0x802   :  { %v3048_v48 = vpop.permute.xlu0 %3047 }
 0x803   :  { %v11526_v49 = vadd.f32 %v3048_v48, %v3040_v38 }
 0x805   :  { %10967 = vtanh.f32 %v11526_v49 }
 0x80f   :  { %v10968_v50 = vpop.eup %10967 }
 0x810   :  { %3053 = vrot.lane.b32.xlu1 %v10968_v50, %s11064_s3 }
 0x882   :  { %v3054_v52 = vpop.permute.xlu1 %3053 }
 0x883   :  { %v3056_v53 = vmul.f32 %v10966_v33, %v3054_v52 }
 0x885   :  { %3058 = vrot.lane.b32.xlu0 %v3056_v53, %s11065_s21 }
 0x8f7   :  { %v3059_v54 = vpop.permute.xlu0 %3058 }
 0x8f8   :  { %v3060_v56 = vsel %vm69_vm1, %v3059_v54, 0 }
 0x8f9   :  { %v11532_v59 = vand.u32 4294901760, %v3060_v56 }
 0x8fb   :  { %v3132_v60 = vsub.f32 %v3060_v56, %v11532_v59 }
 0x8fd   :  { %v3133_v61 = vand.u32 4294901760, %v3132_v60 }
 0x8ff   :  { %v3134_v62 = vsub.f32 %v3132_v60, %v3133_v61 }
 0x901   :  { %v3135_v63 = vand.u32 4294901760, %v3134_v62 }
 0x903   :  { %9472 = vmatmul.mubr.f32.vlgmr.msra.gmra.mrb[10].mxu0 %v3135_v63  ;;  %9538 = vmatmul.mubr.f32.vlgmr.msra.gmra.mrb[22].mxu1 %v3135_v63 }
 0x904   :  { %10377 = vmatpush3.bf16.msra.mxu0 %v11314_v28  ;;  %10413 = vmatpush3.bf16.msra.mxu1 %v11316_v29 }
 0x905   :  { %10378 = vmatprep.subr.bf16.mxu0 %v11061_v0  ;;  %10414 = vmatprep.subr.bf16.mxu1 %v11061_v0 }
 0x906   :  { %9482 = vmatprep.mubr.msk.f32.mxu0 %vm11062_vm0, %v11063_v1  ;;  %9548 = vmatprep.mubr.msk.f32.mxu1 %vm11062_vm0, %v11063_v1 }
 0x908   :  { %10380 = vmatpush3.bf16.msra.mxu0 %v11319_v36  ;;  %10416 = vmatpush3.bf16.msra.mxu1 %v11321_v39 }
 0x909   :  { %10381 = vmatprep.subr.bf16.mxu0 %v11061_v0  ;;  %10417 = vmatprep.subr.bf16.mxu1 %v11061_v0 }
 0x90b   :  { %9483 = vmatmul.mubr.f32.vlgmr.msra.gmra.mrb[10].mxu0 %v11532_v59  ;;  %9549 = vmatmul.mubr.f32.vlgmr.msra.gmra.mrb[22].mxu1 %v11532_v59 }
 0x90c   :  { %10383 = vmatpush3.bf16.msra.mxu0 %v11324_v40  ;;  %10419 = vmatpush3.bf16.msra.mxu1 %v11326_v35 }
 0x90d   :  { %10384 = vmatprep.subr.bf16.mxu0 %v11061_v0  ;;  %10420 = vmatprep.subr.bf16.mxu1 %v11061_v0 }
 0x90e   :  { %9493 = vmatprep.mubr.msk.f32.mxu0 %vm11062_vm0, %v11063_v1  ;;  %9559 = vmatprep.mubr.msk.f32.mxu1 %vm11062_vm0, %v11063_v1 }
 0x910   :  { %10386 = vmatpush3.bf16.msra.mxu0 %v11328_v42  ;;  %10422 = vmatpush3.bf16.msra.mxu1 %v11330_v43 }
 0x911   :  { %10387 = vmatprep.subr.bf16.mxu0 %v11061_v0  ;;  %10423 = vmatprep.subr.bf16.mxu1 %v11061_v0 }
 0x913   :  { %9494 = vmatmul.mubr.f32.vlgmr.msra.gmra.mrb[10].mxu0 %v3132_v60  ;;  %9560 = vmatmul.mubr.f32.vlgmr.msra.gmra.mrb[22].mxu1 %v3132_v60 }
 0x914   :  { %10389 = vmatpush3.bf16.msra.mxu0 %v11287_v51  ;;  %10425 = vmatpush3.bf16.msra.mxu1 %v11291_v55 }
 0x915   :  { %10390 = vmatprep.subr.bf16.mxu0 %v11061_v0  ;;  %10426 = vmatprep.subr.bf16.mxu1 %v11061_v0 }
 0x916   :  { %9504 = vmatprep.mubr.msk.f32.mxu0 %vm11062_vm0, %v11063_v1  ;;  %9570 = vmatprep.mubr.msk.f32.mxu1 %vm11062_vm0, %v11063_v1 }
 0x918   :  { %10392 = vmatpush3.bf16.msra.mxu0 %v11304_v7  ;;  %10428 = vmatpush3.bf16.msra.mxu1 %v11307_v11 }
 0x919   :  { %10393 = vmatprep.subr.bf16.mxu0 %v11061_v0  ;;  %10429 = vmatprep.subr.bf16.mxu1 %v11061_v0 }
 0x91b   :  { %9505 = vmatmul.mubr.f32.vlgmr.msra.gmra.mrb[10].mxu0 %v3133_v61  ;;  %9571 = vmatmul.mubr.f32.vlgmr.msra.gmra.mrb[22].mxu1 %v3133_v61 }
 0x91c   :  { %10395 = vmatpush3.bf16.msra.mxu0 %v11332_v44  ;;  %10431 = vmatpush3.bf16.msra.mxu1 %v11334_v45 }
 0x91d   :  { %10396 = vmatprep.subr.bf16.mxu0 %v11061_v0  ;;  %10432 = vmatprep.subr.bf16.mxu1 %v11061_v0 }
 0x91e   :  { %9515 = vmatprep.mubr.msk.f32.mxu0 %vm11062_vm0, %v11063_v1  ;;  %9581 = vmatprep.mubr.msk.f32.mxu1 %vm11062_vm0, %v11063_v1 }
 0x920   :  { %10398 = vmatpush3.bf16.msra.mxu0 %v11336_v46  ;;  %10434 = vmatpush3.bf16.msra.mxu1 %v11338_v47 }
 0x921   :  { %10399 = vmatprep.subr.bf16.mxu0 %v11061_v0  ;;  %10435 = vmatprep.subr.bf16.mxu1 %v11061_v0 }
 0x923   :  { %9516 = vmatmul.mubr.f32.vlgmr.msra.gmra.mrb[10].mxu0 %v11532_v59  ;;  %9582 = vmatmul.mubr.f32.vlgmr.msra.gmra.mrb[22].mxu1 %v11532_v59 }
 0x924   :  { %10401 = vmatpush3.bf16.msra.mxu0 %v11287_v51  ;;  %10437 = vmatpush3.bf16.msra.mxu1 %v11291_v55 }
 0x925   :  { %10402 = vmatprep.subr.bf16.mxu0 %v11061_v0  ;;  %10438 = vmatprep.subr.bf16.mxu1 %v11061_v0 }
 0x926   :  { %9526 = vmatprep.mubr.msk.f32.mxu0 %vm11062_vm0, %v11063_v1  ;;  %9592 = vmatprep.mubr.msk.f32.mxu1 %vm11062_vm0, %v11063_v1 }
 0x928   :  { %10404 = vmatpush3.bf16.msra.mxu0 %v11304_v7  ;;  %10440 = vmatpush3.bf16.msra.mxu1 %v11307_v11 }
 0x929   :  { %10441 = vmatprep.subr.bf16.mxu0 %v11061_v0  ;;  %10477 = vmatprep.subr.bf16.mxu1 %v11061_v0 }
 0x92b   :  { %9527 = vmatmul.mubr.f32.vlgmr.msra.gmra.mrb[10].mxu0 %v11532_v59  ;;  %9593 = vmatmul.mubr.f32.vlgmr.msra.gmra.mrb[22].mxu1 %v11532_v59 }
 0x92c   :  { %10443 = vmatpush3.bf16.msra.mxu0 %v11287_v51  ;;  %10479 = vmatpush3.bf16.msra.mxu1 %v11291_v55 }
 0x92d   :  { %10444 = vmatprep.subr.bf16.mxu0 %v11061_v0  ;;  %10480 = vmatprep.subr.bf16.mxu1 %v11061_v0 }
 0x92e   :  { %9603 = vmatprep.mubr.msk.f32.mxu0 %vm11062_vm0, %v11063_v1  ;;  %9669 = vmatprep.mubr.msk.f32.mxu1 %vm11062_vm0, %v11063_v1 }
 0x930   :  { %10446 = vmatpush3.bf16.msra.mxu0 %v11304_v7  ;;  %10482 = vmatpush3.bf16.msra.mxu1 %v11307_v11 }
 0x931   :  { %10447 = vmatprep.subr.bf16.mxu0 %v11061_v0  ;;  %10483 = vmatprep.subr.bf16.mxu1 %v11061_v0 }
 0x9fe   :  { %v11613_v2 = vpop.f32.mrb[10].mxu0  ;;  %v4028_v3 = vpop.f32.mrb[22].mxu1 }
 0x9ff   :  { %v10770_v4 = vadd.f32 %v11425_v57, %v4028_v3  ;;  %v9528_v5 = vpop.f32.mrb[11].mxu0  ;;  %v9594_v6 = vpop.f32.mrb[23].mxu1 }
 0xa01   :  { %10969 = vtanh.f32 %v10770_v4  ;;  %v8606_v9 = vmul.f32 -1.442695, %v10770_v4 }
 0xa03   :  { %10971 = vpow2.f32 %v8606_v9 }
 0xa0b   :  { %v10970_v8 = vpop.eup %10969 }
 0xa0c   :  { %4041 = vrot.lane.b32.xlu1 %v10970_v8, %s11064_s3 }
 0xa0d   :  { %v10972_v10 = vpop.eup %10971 }
 0xa0e   :  { %v4035_v12 = vadd.f32 1.0, %v10972_v10 }
 0xa10   :  { %10973 = vrcp.f32 %v4035_v12 }
 0xa1a   :  { %v10974_v13 = vpop.eup %10973 }
 0xa1b   :  { %v4039_v16 = vmul.f32 %v10974_v13, %v11526_v49 }
 0xa7e   :  { %v4042_v14 = vpop.permute.xlu1 %4041 }
 0xa7f   :  { %v4044_v15 = vmul.f32 %v10974_v13, %v4042_v14 }
 0xa81   :  { %4046 = vrot.lane.b32.xlu0 %v4044_v15, %s11065_s21 }
 0xaf3   :  { %v4047_v17 = vpop.permute.xlu0 %4046 }
 0xaf4   :  { %v11619_v18 = vadd.f32 %v4047_v17, %v4039_v16 }
 0xaf6   :  { %10975 = vtanh.f32 %v11619_v18 }
 0xb00   :  { %v10976_v19 = vpop.eup %10975 }
 0xb01   :  { %4052 = vrot.lane.b32.xlu1 %v10976_v19, %s11064_s3 }
 0xb73   :  { %v4053_v41 = vpop.permute.xlu1 %4052 }
 0xb74   :  { %v4055_v20 = vmul.f32 %v10974_v13, %v4053_v41 }
 0xb76   :  { %4057 = vrot.lane.b32.xlu0 %v4055_v20, %s11065_s21 }
 0xbe8   :  { %v4058_v21 = vpop.permute.xlu0 %4057 }
 0xbe9   :  { %v4059_v23 = vsel %vm69_vm1, %v4058_v21, 0 }
 0xbea   :  { %v11625_v24 = vand.u32 4294901760, %v4059_v23 }
 0xbec   :  { %v4131_v25 = vsub.f32 %v4059_v23, %v11625_v24 }
 0xbee   :  { %v4132_v26 = vand.u32 4294901760, %v4131_v25 }
 0xbf0   :  { %v4133_v27 = vsub.f32 %v4131_v25, %v4132_v26 }
 0xbf2   :  { %v4134_v30 = vand.u32 4294901760, %v4133_v27 }
 0xbf4   :  { %9604 = vmatmul.mubr.f32.vlgmr.msra.gmra.mrb[12].mxu0 %v4134_v30  ;;  %9670 = vmatmul.mubr.f32.vlgmr.msra.gmra.mrb[24].mxu1 %v4134_v30 }
 0xbf5   :  { %10449 = vmatpush3.bf16.msra.mxu0 %v11314_v28  ;;  %10485 = vmatpush3.bf16.msra.mxu1 %v11316_v29 }
 0xbf6   :  { %10450 = vmatprep.subr.bf16.mxu0 %v11061_v0  ;;  %10486 = vmatprep.subr.bf16.mxu1 %v11061_v0 }
 0xbf7   :  { %9614 = vmatprep.mubr.msk.f32.mxu0 %vm11062_vm0, %v11063_v1  ;;  %9680 = vmatprep.mubr.msk.f32.mxu1 %vm11062_vm0, %v11063_v1 }
 0xbf9   :  { %10452 = vmatpush3.bf16.msra.mxu0 %v11319_v36  ;;  %10488 = vmatpush3.bf16.msra.mxu1 %v11321_v39 }
 0xbfa   :  { %10453 = vmatprep.subr.bf16.mxu0 %v11061_v0  ;;  %10489 = vmatprep.subr.bf16.mxu1 %v11061_v0 }
 0xbfc   :  { %9615 = vmatmul.mubr.f32.vlgmr.msra.gmra.mrb[12].mxu0 %v11625_v24  ;;  %9681 = vmatmul.mubr.f32.vlgmr.msra.gmra.mrb[24].mxu1 %v11625_v24 }
 0xbfd   :  { %10455 = vmatpush3.bf16.msra.mxu0 %v11324_v40  ;;  %10491 = vmatpush3.bf16.msra.mxu1 %v11326_v35 }
 0xbfe   :  { %10456 = vmatprep.subr.bf16.mxu0 %v11061_v0  ;;  %10492 = vmatprep.subr.bf16.mxu1 %v11061_v0 }
 0xbff   :  { %9625 = vmatprep.mubr.msk.f32.mxu0 %vm11062_vm0, %v11063_v1  ;;  %9691 = vmatprep.mubr.msk.f32.mxu1 %vm11062_vm0, %v11063_v1 }
 0xc01   :  { %10458 = vmatpush3.bf16.msra.mxu0 %v11328_v42  ;;  %10494 = vmatpush3.bf16.msra.mxu1 %v11330_v43 }
 0xc02   :  { %10459 = vmatprep.subr.bf16.mxu0 %v11061_v0  ;;  %10495 = vmatprep.subr.bf16.mxu1 %v11061_v0 }
 0xc04   :  { %9626 = vmatmul.mubr.f32.vlgmr.msra.gmra.mrb[12].mxu0 %v4131_v25  ;;  %9692 = vmatmul.mubr.f32.vlgmr.msra.gmra.mrb[24].mxu1 %v4131_v25 }
 0xc05   :  { %10461 = vmatpush3.bf16.msra.mxu0 %v11287_v51  ;;  %10497 = vmatpush3.bf16.msra.mxu1 %v11291_v55 }
 0xc06   :  { %10462 = vmatprep.subr.bf16.mxu0 %v11061_v0  ;;  %10498 = vmatprep.subr.bf16.mxu1 %v11061_v0 }
 0xc07   :  { %9636 = vmatprep.mubr.msk.f32.mxu0 %vm11062_vm0, %v11063_v1  ;;  %9702 = vmatprep.mubr.msk.f32.mxu1 %vm11062_vm0, %v11063_v1 }
 0xc09   :  { %10464 = vmatpush3.bf16.msra.mxu0 %v11304_v7  ;;  %10500 = vmatpush3.bf16.msra.mxu1 %v11307_v11 }
 0xc0a   :  { %10465 = vmatprep.subr.bf16.mxu0 %v11061_v0  ;;  %10501 = vmatprep.subr.bf16.mxu1 %v11061_v0 }
 0xc0c   :  { %9637 = vmatmul.mubr.f32.vlgmr.msra.gmra.mrb[12].mxu0 %v4132_v26  ;;  %9703 = vmatmul.mubr.f32.vlgmr.msra.gmra.mrb[24].mxu1 %v4132_v26 }
 0xc0d   :  { %10467 = vmatpush3.bf16.msra.mxu0 %v11332_v44  ;;  %10503 = vmatpush3.bf16.msra.mxu1 %v11334_v45 }
 0xc0e   :  { %10468 = vmatprep.subr.bf16.mxu0 %v11061_v0  ;;  %10504 = vmatprep.subr.bf16.mxu1 %v11061_v0 }
 0xc0f   :  { %9647 = vmatprep.mubr.msk.f32.mxu0 %vm11062_vm0, %v11063_v1  ;;  %9713 = vmatprep.mubr.msk.f32.mxu1 %vm11062_vm0, %v11063_v1 }
 0xc11   :  { %10470 = vmatpush3.bf16.msra.mxu0 %v11336_v46  ;;  %10506 = vmatpush3.bf16.msra.mxu1 %v11338_v47 }
 0xc12   :  { %10471 = vmatprep.subr.bf16.mxu0 %v11061_v0  ;;  %10507 = vmatprep.subr.bf16.mxu1 %v11061_v0 }
 0xc14   :  { %9648 = vmatmul.mubr.f32.vlgmr.msra.gmra.mrb[12].mxu0 %v11625_v24  ;;  %9714 = vmatmul.mubr.f32.vlgmr.msra.gmra.mrb[24].mxu1 %v11625_v24 }
 0xc15   :  { %10473 = vmatpush3.bf16.msra.mxu0 %v11287_v51  ;;  %10509 = vmatpush3.bf16.msra.mxu1 %v11291_v55 }
 0xc16   :  { %10474 = vmatprep.subr.bf16.mxu0 %v11061_v0  ;;  %10510 = vmatprep.subr.bf16.mxu1 %v11061_v0 }
 0xc17   :  { %9658 = vmatprep.mubr.msk.f32.mxu0 %vm11062_vm0, %v11063_v1  ;;  %9724 = vmatprep.mubr.msk.f32.mxu1 %vm11062_vm0, %v11063_v1 }
 0xc19   :  { %10476 = vmatpush3.bf16.msra.mxu0 %v11304_v7  ;;  %10512 = vmatpush3.bf16.msra.mxu1 %v11307_v11 }
 0xc1a   :  { %10513 = vmatprep.subr.bf16.mxu0 %v11061_v0  ;;  %10549 = vmatprep.subr.bf16.mxu1 %v11061_v0 }
 0xc1c   :  { %9659 = vmatmul.mubr.f32.vlgmr.msra.gmra.mrb[12].mxu0 %v11625_v24  ;;  %9725 = vmatmul.mubr.f32.vlgmr.msra.gmra.mrb[24].mxu1 %v11625_v24 }
 0xc1d   :  { %10515 = vmatpush3.bf16.msra.mxu0 %v11287_v51  ;;  %10551 = vmatpush3.bf16.msra.mxu1 %v11291_v55 }
 0xc1e   :  { %10516 = vmatprep.subr.bf16.mxu0 %v11061_v0  ;;  %10552 = vmatprep.subr.bf16.mxu1 %v11061_v0 }
 0xc1f   :  { %9735 = vmatprep.mubr.msk.f32.mxu0 %vm11062_vm0, %v11063_v1  ;;  %9801 = vmatprep.mubr.msk.f32.mxu1 %vm11062_vm0, %v11063_v1 }
 0xc21   :  { %10518 = vmatpush3.bf16.msra.mxu0 %v11304_v7  ;;  %10554 = vmatpush3.bf16.msra.mxu1 %v11307_v11 }
 0xc22   :  { %10519 = vmatprep.subr.bf16.mxu0 %v11061_v0  ;;  %10555 = vmatprep.subr.bf16.mxu1 %v11061_v0 }
 0xcef   :  { %v11706_v31 = vpop.f32.mrb[12].mxu0  ;;  %v5027_v32 = vpop.f32.mrb[24].mxu1 }
 0xcf0   :  { %v10772_v33 = vadd.f32 %v11425_v57, %v5027_v32  ;;  %v9660_v34 = vpop.f32.mrb[13].mxu0  ;;  %v9726_v37 = vpop.f32.mrb[25].mxu1 }
 0xcf2   :  { %10977 = vtanh.f32 %v10772_v33  ;;  %v8607_v48 = vmul.f32 -1.442695, %v10772_v33 }
 0xcf4   :  { %10979 = vpow2.f32 %v8607_v48 }
 0xcfc   :  { %v10978_v38 = vpop.eup %10977 }
 0xcfd   :  { %5040 = vrot.lane.b32.xlu1 %v10978_v38, %s11064_s3 }
 0xcfe   :  { %v10980_v49 = vpop.eup %10979 }
 0xcff   :  { %v5034_v50 = vadd.f32 1.0, %v10980_v49 }
 0xd01   :  { %10981 = vrcp.f32 %v5034_v50 }
 0xd0b   :  { %v10982_v52 = vpop.eup %10981 }
 0xd0c   :  { %v5038_v56 = vmul.f32 %v10982_v52, %v11619_v18 }
 0xd6f   :  { %v5041_v53 = vpop.permute.xlu1 %5040 }
 0xd70   :  { %v5043_v54 = vmul.f32 %v10982_v52, %v5041_v53  ;;  %v11897_v53 = vld [vmem:[%s12059_s7] ss:$0 sm:$0xff] }
 0xd72   :  { %5045 = vrot.lane.b32.xlu0 %v5043_v54, %s11065_s21 }
 0xde4   :  { %v5046_v59 = vpop.permute.xlu0 %5045 }
 0xde5   :  { %v11712_v60 = vadd.f32 %v5046_v59, %v5038_v56 }
 0xde7   :  { %10983 = vtanh.f32 %v11712_v60 }
 0xdf1   :  { %v10984_v61 = vpop.eup %10983 }
 0xdf2   :  { %5051 = vrot.lane.b32.xlu1 %v10984_v61, %s11064_s3 }
 0xe64   :  { %v5052_v62 = vpop.permute.xlu1 %5051 }
 0xe65   :  { %v5054_v63 = vmul.f32 %v10982_v52, %v5052_v62 }
 0xe67   :  { %5056 = vrot.lane.b32.xlu0 %v5054_v63, %s11065_s21 }
 0xed9   :  { %v5057_v3 = vpop.permute.xlu0 %5056 }
 0xeda   :  { %v5058_v4 = vsel %vm69_vm1, %v5057_v3, 0 }
 0xedb   :  { %v11718_v5 = vand.u32 4294901760, %v5058_v4 }
 0xedd   :  { %v5130_v6 = vsub.f32 %v5058_v4, %v11718_v5 }
 0xedf   :  { %v5131_v8 = vand.u32 4294901760, %v5130_v6 }
 0xee1   :  { %v5132_v9 = vsub.f32 %v5130_v6, %v5131_v8 }
 0xee3   :  { %v5133_v10 = vand.u32 4294901760, %v5132_v9 }
 0xee5   :  { %9736 = vmatmul.mubr.f32.vlgmr.msra.gmra.mrb[14].mxu0 %v5133_v10  ;;  %9802 = vmatmul.mubr.f32.vlgmr.msra.gmra.mrb[26].mxu1 %v5133_v10 }
 0xee6   :  { %10521 = vmatpush3.bf16.msra.mxu0 %v11314_v28  ;;  %10557 = vmatpush3.bf16.msra.mxu1 %v11316_v29 }
 0xee7   :  { %10522 = vmatprep.subr.bf16.mxu0 %v11061_v0  ;;  %10558 = vmatprep.subr.bf16.mxu1 %v11061_v0 }
 0xee8   :  { %9746 = vmatprep.mubr.msk.f32.mxu0 %vm11062_vm0, %v11063_v1  ;;  %9812 = vmatprep.mubr.msk.f32.mxu1 %vm11062_vm0, %v11063_v1 }
 0xeea   :  { %10524 = vmatpush3.bf16.msra.mxu0 %v11319_v36  ;;  %10560 = vmatpush3.bf16.msra.mxu1 %v11321_v39 }
 0xeeb   :  { %10525 = vmatprep.subr.bf16.mxu0 %v11061_v0  ;;  %10561 = vmatprep.subr.bf16.mxu1 %v11061_v0 }
 0xeed   :  { %9747 = vmatmul.mubr.f32.vlgmr.msra.gmra.mrb[14].mxu0 %v11718_v5  ;;  %9813 = vmatmul.mubr.f32.vlgmr.msra.gmra.mrb[26].mxu1 %v11718_v5 }
 0xeee   :  { %10527 = vmatpush3.bf16.msra.mxu0 %v11324_v40  ;;  %10563 = vmatpush3.bf16.msra.mxu1 %v11326_v35 }
 0xeef   :  { %10528 = vmatprep.subr.bf16.mxu0 %v11061_v0  ;;  %10564 = vmatprep.subr.bf16.mxu1 %v11061_v0 }
 0xef0   :  { %9757 = vmatprep.mubr.msk.f32.mxu0 %vm11062_vm0, %v11063_v1  ;;  %9823 = vmatprep.mubr.msk.f32.mxu1 %vm11062_vm0, %v11063_v1 }
 0xef2   :  { %10530 = vmatpush3.bf16.msra.mxu0 %v11328_v42  ;;  %10566 = vmatpush3.bf16.msra.mxu1 %v11330_v43 }
 0xef3   :  { %10531 = vmatprep.subr.bf16.mxu0 %v11061_v0  ;;  %10567 = vmatprep.subr.bf16.mxu1 %v11061_v0 }
 0xef5   :  { %9758 = vmatmul.mubr.f32.vlgmr.msra.gmra.mrb[14].mxu0 %v5130_v6  ;;  %9824 = vmatmul.mubr.f32.vlgmr.msra.gmra.mrb[26].mxu1 %v5130_v6 }
 0xef6   :  { %10533 = vmatpush3.bf16.msra.mxu0 %v11287_v51  ;;  %10569 = vmatpush3.bf16.msra.mxu1 %v11291_v55 }
 0xef7   :  { %10534 = vmatprep.subr.bf16.mxu0 %v11061_v0  ;;  %10570 = vmatprep.subr.bf16.mxu1 %v11061_v0 }
 0xef8   :  { %9768 = vmatprep.mubr.msk.f32.mxu0 %vm11062_vm0, %v11063_v1  ;;  %9834 = vmatprep.mubr.msk.f32.mxu1 %vm11062_vm0, %v11063_v1 }
 0xefa   :  { %10536 = vmatpush3.bf16.msra.mxu0 %v11304_v7  ;;  %10572 = vmatpush3.bf16.msra.mxu1 %v11307_v11 }
 0xefb   :  { %10537 = vmatprep.subr.bf16.mxu0 %v11061_v0  ;;  %10573 = vmatprep.subr.bf16.mxu1 %v11061_v0 }
 0xefd   :  { %9769 = vmatmul.mubr.f32.vlgmr.msra.gmra.mrb[14].mxu0 %v5131_v8  ;;  %9835 = vmatmul.mubr.f32.vlgmr.msra.gmra.mrb[26].mxu1 %v5131_v8 }
 0xefe   :  { %10539 = vmatpush3.bf16.msra.mxu0 %v11332_v44  ;;  %10575 = vmatpush3.bf16.msra.mxu1 %v11334_v45 }
 0xeff   :  { %10540 = vmatprep.subr.bf16.mxu0 %v11061_v0  ;;  %10576 = vmatprep.subr.bf16.mxu1 %v11061_v0 }
 0xf00   :  { %9779 = vmatprep.mubr.msk.f32.mxu0 %vm11062_vm0, %v11063_v1  ;;  %9845 = vmatprep.mubr.msk.f32.mxu1 %vm11062_vm0, %v11063_v1 }
 0xf02   :  { %10542 = vmatpush3.bf16.msra.mxu0 %v11336_v46  ;;  %10578 = vmatpush3.bf16.msra.mxu1 %v11338_v47 }
 0xf03   :  { %10543 = vmatprep.subr.bf16.mxu0 %v11061_v0  ;;  %10579 = vmatprep.subr.bf16.mxu1 %v11061_v0 }
 0xf05   :  { %9780 = vmatmul.mubr.f32.vlgmr.msra.gmra.mrb[14].mxu0 %v11718_v5  ;;  %9846 = vmatmul.mubr.f32.vlgmr.msra.gmra.mrb[26].mxu1 %v11718_v5 }
 0xf06   :  { %10545 = vmatpush3.bf16.msra.mxu0 %v11287_v51  ;;  %10581 = vmatpush3.bf16.msra.mxu1 %v11291_v55 }
 0xf07   :  { %10546 = vmatprep.subr.bf16.mxu0 %v11061_v0  ;;  %10582 = vmatprep.subr.bf16.mxu1 %v11061_v0 }
 0xf08   :  { %9790 = vmatprep.mubr.msk.f32.mxu0 %vm11062_vm0, %v11063_v1  ;;  %9856 = vmatprep.mubr.msk.f32.mxu1 %vm11062_vm0, %v11063_v1 }
 0xf0a   :  { %10548 = vmatpush3.bf16.msra.mxu0 %v11304_v7  ;;  %10584 = vmatpush3.bf16.msra.mxu1 %v11307_v11 }
 0xf0b   :  { %10585 = vmatprep.subr.bf16.mxu0 %v11061_v0  ;;  %10621 = vmatprep.subr.bf16.mxu1 %v11061_v0 }
 0xf0d   :  { %9791 = vmatmul.mubr.f32.vlgmr.msra.gmra.mrb[14].mxu0 %v11718_v5  ;;  %9857 = vmatmul.mubr.f32.vlgmr.msra.gmra.mrb[26].mxu1 %v11718_v5 }
 0xf0e   :  { %10587 = vmatpush3.bf16.msra.mxu0 %v11287_v51  ;;  %10623 = vmatpush3.bf16.msra.mxu1 %v11291_v55 }
 0xf0f   :  { %10588 = vmatprep.subr.bf16.mxu0 %v11061_v0  ;;  %10624 = vmatprep.subr.bf16.mxu1 %v11061_v0 }
 0xf10   :  { %9867 = vmatprep.mubr.msk.f32.mxu0 %vm11062_vm0, %v11063_v1  ;;  %9933 = vmatprep.mubr.msk.f32.mxu1 %vm11062_vm0, %v11063_v1 }
 0xf12   :  { %10590 = vmatpush3.bf16.msra.mxu0 %v11304_v7  ;;  %10626 = vmatpush3.bf16.msra.mxu1 %v11307_v11 }
 0xf13   :  { %10591 = vmatprep.subr.bf16.mxu0 %v11061_v0  ;;  %10627 = vmatprep.subr.bf16.mxu1 %v11061_v0 }
 0xfe0   :  { %v11799_v12 = vpop.f32.mrb[14].mxu0  ;;  %v6026_v13 = vpop.f32.mrb[26].mxu1 }
 0xfe1   :  { %v10774_v14 = vadd.f32 %v11425_v57, %v6026_v13  ;;  %v9792_v15 = vpop.f32.mrb[15].mxu0  ;;  %v9858_v16 = vpop.f32.mrb[27].mxu1 }
 0xfe3   :  { %10985 = vtanh.f32 %v10774_v14  ;;  %v8608_v18 = vmul.f32 -1.442695, %v10774_v14 }
 0xfe5   :  { %10987 = vpow2.f32 %v8608_v18 }
 0xfed   :  { %v10986_v17 = vpop.eup %10985 }
 0xfee   :  { %6039 = vrot.lane.b32.xlu1 %v10986_v17, %s11064_s3 }
 0xfef   :  { %v10988_v19 = vpop.eup %10987 }
 0xff0   :  { %v6033_v41 = vadd.f32 1.0, %v10988_v19 }
 0xff2   :  { %10989 = vrcp.f32 %v6033_v41 }
 0xffc   :  { %v10990_v20 = vpop.eup %10989 }
 0xffd   :  { %v6037_v24 = vmul.f32 %v10990_v20, %v11712_v60 }
0x1060   :  { %v6040_v21 = vpop.permute.xlu1 %6039 }
0x1061   :  { %v6042_v23 = vmul.f32 %v10990_v20, %v6040_v21 }
0x1063   :  { %6044 = vrot.lane.b32.xlu0 %v6042_v23, %s11065_s21 }
0x10d5   :  { %v6045_v25 = vpop.permute.xlu0 %6044 }
0x10d6   :  { %v11805_v57 = vadd.f32 %v6045_v25, %v6037_v24 }
0x10d8   :  { %10991 = vtanh.f32 %v11805_v57 }
0x10e2   :  { %v10992_v26 = vpop.eup %10991 }
0x10e3   :  { %6050 = vrot.lane.b32.xlu1 %v10992_v26, %s11064_s3 }
0x1155   :  { %v6051_v27 = vpop.permute.xlu1 %6050 }
0x1156   :  { %v6053_v30 = vmul.f32 %v10990_v20, %v6051_v27 }
0x1158   :  { %6055 = vrot.lane.b32.xlu0 %v6053_v30, %s11065_s21 }
0x11ca   :  { %v6056_v32 = vpop.permute.xlu0 %6055 }
0x11cb   :  { %v6057_v33 = vsel %vm69_vm1, %v6056_v32, 0  ;;  %v11991_v32 = vld [vmem:[%s12061_s9] ss:$0 sm:$0xff]  ;;  %s11069_s9 = smov 4  }
0x11cc   :  { %v11811_v34 = vand.u32 4294901760, %v6057_v33 }
0x11ce   :  { %v6129_v37 = vsub.f32 %v6057_v33, %v11811_v34  ;;  %v10767_v33 = vadd.f32 %v11991_v32, %v11520_v22  ;;  %v10773_v22 = vadd.f32 %v11991_v32, %v11799_v12 }
0x11d0   :  { %v6130_v38 = vand.u32 4294901760, %v6129_v37 }
0x11d2   :  { %v6131_v48 = vsub.f32 %v6129_v37, %v6130_v38 }
0x11d4   :  { %v6132_v49 = vand.u32 4294901760, %v6131_v48 }
0x11d6   :  { %9868 = vmatmul.mubr.f32.vlgmr.msra.gmra.mrb[16].mxu0 %v6132_v49  ;;  %9934 = vmatmul.mubr.f32.vlgmr.msra.gmra.mrb[28].mxu1 %v6132_v49  ;;  %v10769_v49 = vadd.f32 %v11991_v32, %v11613_v2 }
0x11d7   :  { %10593 = vmatpush3.bf16.msra.mxu0 %v11314_v28  ;;  %10629 = vmatpush3.bf16.msra.mxu1 %v11316_v29 }
0x11d8   :  { %10594 = vmatprep.subr.bf16.mxu0 %v11061_v0  ;;  %10630 = vmatprep.subr.bf16.mxu1 %v11061_v0 }
0x11d9   :  { %9878 = vmatprep.mubr.msk.f32.mxu0 %vm11062_vm0, %v11063_v1  ;;  %9944 = vmatprep.mubr.msk.f32.mxu1 %vm11062_vm0, %v11063_v1 }
0x11db   :  { %10596 = vmatpush3.bf16.msra.mxu0 %v11319_v36  ;;  %10632 = vmatpush3.bf16.msra.mxu1 %v11321_v39 }
0x11dc   :  { %10597 = vmatprep.subr.bf16.mxu0 %v11061_v0  ;;  %10633 = vmatprep.subr.bf16.mxu1 %v11061_v0 }
0x11de   :  { %9879 = vmatmul.mubr.f32.vlgmr.msra.gmra.mrb[16].mxu0 %v11811_v34  ;;  %9945 = vmatmul.mubr.f32.vlgmr.msra.gmra.mrb[28].mxu1 %v11811_v34 }
0x11df   :  { %10599 = vmatpush3.bf16.msra.mxu0 %v11324_v40  ;;  %10635 = vmatpush3.bf16.msra.mxu1 %v11326_v35 }
0x11e0   :  { %10600 = vmatprep.subr.bf16.mxu0 %v11061_v0  ;;  %10636 = vmatprep.subr.bf16.mxu1 %v11061_v0 }
0x11e1   :  { %9889 = vmatprep.mubr.msk.f32.mxu0 %vm11062_vm0, %v11063_v1  ;;  %9955 = vmatprep.mubr.msk.f32.mxu1 %vm11062_vm0, %v11063_v1 }
0x11e3   :  { %10602 = vmatpush3.bf16.msra.mxu0 %v11328_v42  ;;  %10638 = vmatpush3.bf16.msra.mxu1 %v11330_v43 }
0x11e4   :  { %10603 = vmatprep.subr.bf16.mxu0 %v11061_v0  ;;  %10639 = vmatprep.subr.bf16.mxu1 %v11061_v0 }
0x11e6   :  { %9890 = vmatmul.mubr.f32.vlgmr.msra.gmra.mrb[16].mxu0 %v6129_v37  ;;  %9956 = vmatmul.mubr.f32.vlgmr.msra.gmra.mrb[28].mxu1 %v6129_v37 }
0x11e7   :  { %10605 = vmatpush3.bf16.msra.mxu0 %v11287_v51  ;;  %10641 = vmatpush3.bf16.msra.mxu1 %v11291_v55 }
0x11e8   :  { %10606 = vmatprep.subr.bf16.mxu0 %v11061_v0  ;;  %10642 = vmatprep.subr.bf16.mxu1 %v11061_v0 }
0x11e9   :  { %9900 = vmatprep.mubr.msk.f32.mxu0 %vm11062_vm0, %v11063_v1  ;;  %9966 = vmatprep.mubr.msk.f32.mxu1 %vm11062_vm0, %v11063_v1 }
0x11eb   :  { %10608 = vmatpush3.bf16.msra.mxu0 %v11304_v7  ;;  %10644 = vmatpush3.bf16.msra.mxu1 %v11307_v11 }
0x11ec   :  { %10609 = vmatprep.subr.bf16.mxu0 %v11061_v0  ;;  %10645 = vmatprep.subr.bf16.mxu1 %v11061_v0 }
0x11ee   :  { %9901 = vmatmul.mubr.f32.vlgmr.msra.gmra.mrb[16].mxu0 %v6130_v38  ;;  %9967 = vmatmul.mubr.f32.vlgmr.msra.gmra.mrb[28].mxu1 %v6130_v38 }
0x11ef   :  { %10611 = vmatpush3.bf16.msra.mxu0 %v11332_v44  ;;  %10647 = vmatpush3.bf16.msra.mxu1 %v11334_v45 }
0x11f0   :  { %10612 = vmatprep.subr.bf16.mxu0 %v11061_v0  ;;  %10648 = vmatprep.subr.bf16.mxu1 %v11061_v0 }
0x11f1   :  { %9911 = vmatprep.mubr.msk.f32.mxu0 %vm11062_vm0, %v11063_v1  ;;  %9977 = vmatprep.mubr.msk.f32.mxu1 %vm11062_vm0, %v11063_v1 }
0x11f3   :  { %10614 = vmatpush3.bf16.msra.mxu0 %v11336_v46  ;;  %10650 = vmatpush3.bf16.msra.mxu1 %v11338_v47 }
0x11f4   :  { %10615 = vmatprep.subr.bf16.mxu0 %v11061_v0  ;;  %10651 = vmatprep.subr.bf16.mxu1 %v11061_v0 }
0x11f6   :  { %9912 = vmatmul.mubr.f32.vlgmr.msra.gmra.mrb[16].mxu0 %v11811_v34  ;;  %9978 = vmatmul.mubr.f32.vlgmr.msra.gmra.mrb[28].mxu1 %v11811_v34 }
0x11f7   :  { %10617 = vmatpush3.bf16.msra.mxu0 %v11287_v51  ;;  %10653 = vmatpush3.bf16.msra.mxu1 %v11291_v55 }
0x11f8   :  { %10618 = vmatprep.subr.bf16.mxu0 %v11061_v0  ;;  %10654 = vmatprep.subr.bf16.mxu1 %v11061_v0 }
0x11f9   :  { %9922 = vmatprep.mubr.msk.f32.mxu0 %vm11062_vm0, %v11063_v1  ;;  %9988 = vmatprep.mubr.msk.f32.mxu1 %vm11062_vm0, %v11063_v1 }
0x11fb   :  { %10620 = vmatpush3.bf16.msra.mxu0 %v11304_v7  ;;  %10656 = vmatpush3.bf16.msra.mxu1 %v11307_v11 }
0x11fc   :  { %10657 = vmatprep.subr.bf16.mxu0 %v11061_v0  ;;  %10693 = vmatprep.subr.bf16.mxu1 %v11061_v0 }
0x11fe   :  { %9923 = vmatmul.mubr.f32.vlgmr.msra.gmra.mrb[16].mxu0 %v11811_v34  ;;  %9989 = vmatmul.mubr.f32.vlgmr.msra.gmra.mrb[28].mxu1 %v11811_v34  ;;  %v10771_v34 = vadd.f32 %v11991_v32, %v11706_v31 }
0x11ff   :  { %10659 = vmatpush3.bf16.msra.mxu0 %v11287_v51  ;;  %10695 = vmatpush3.bf16.msra.mxu1 %v11291_v55 }
0x1200   :  { %10660 = vmatprep.subr.bf16.mxu0 %v11061_v0  ;;  %10696 = vmatprep.subr.bf16.mxu1 %v11061_v0 }
0x1201   :  { %9999 = vmatprep.mubr.msk.f32.mxu0 %vm11062_vm0, %v11063_v1  ;;  %10065 = vmatprep.mubr.msk.f32.mxu1 %vm11062_vm0, %v11063_v1 }
0x1203   :  { %10662 = vmatpush3.bf16.msra.mxu0 %v11304_v7  ;;  %10698 = vmatpush3.bf16.msra.mxu1 %v11307_v11 }
0x1204   :  { %10663 = vmatprep.subr.bf16.mxu0 %v11061_v0  ;;  %10699 = vmatprep.subr.bf16.mxu1 %v11061_v0 }
0x12d1   :  { %v11892_v50 = vpop.f32.mrb[16].mxu0  ;;  %v7025_v52 = vpop.f32.mrb[28].mxu1 }
0x12d2   :  { %v10776_v54 = vadd.f32 %v11897_v53, %v7025_v52  ;;  %v9924_v56 = vpop.f32.mrb[17].mxu0  ;;  %v9990_v59 = vpop.f32.mrb[29].mxu1  ;;  %v10775_v37 = vadd.f32 %v11991_v32, %v11892_v50 }
0x12d4   :  { %10993 = vtanh.f32 %v10776_v54  ;;  %v8609_v61 = vmul.f32 -1.442695, %v10776_v54 }
0x12d6   :  { %10995 = vpow2.f32 %v8609_v61 }
0x12de   :  { %v10994_v60 = vpop.eup %10993 }
0x12df   :  { %7038 = vrot.lane.b32.xlu1 %v10994_v60, %s11064_s3 }
0x12e0   :  { %v10996_v62 = vpop.eup %10995 }
0x12e1   :  { %v7032_v63 = vadd.f32 1.0, %v10996_v62 }
0x12e3   :  { %10997 = vrcp.f32 %v7032_v63 }
0x12ed   :  { %v10998_v3 = vpop.eup %10997 }
0x12ee   :  { %v7036_v6 = vmul.f32 %v10998_v3, %v11805_v57 }
0x1351   :  { %v7039_v4 = vpop.permute.xlu1 %7038 }
0x1352   :  { %v7041_v5 = vmul.f32 %v10998_v3, %v7039_v4 }
0x1354   :  { %7043 = vrot.lane.b32.xlu0 %v7041_v5, %s11065_s21 }
0x13c6   :  { %v7044_v8 = vpop.permute.xlu0 %7043 }
0x13c7   :  { %v11903_v9 = vadd.f32 %v7044_v8, %v7036_v6 }
0x13c9   :  { %10999 = vtanh.f32 %v11903_v9 }
0x13d3   :  { %v11000_v10 = vpop.eup %10999 }
0x13d4   :  { %7049 = vrot.lane.b32.xlu1 %v11000_v10, %s11064_s3 }
0x1446   :  { %v7050_v13 = vpop.permute.xlu1 %7049 }
0x1447   :  { %v7052_v14 = vmul.f32 %v10998_v3, %v7050_v13 }
0x1449   :  { %7054 = vrot.lane.b32.xlu0 %v7052_v14, %s11065_s21 }
0x14bb   :  { %v7055_v15 = vpop.permute.xlu0 %7054 }
0x14bc   :  { %v7056_v16 = vsel %vm69_vm1, %v7055_v15, 0 }
0x14bd   :  { %v11909_v17 = vand.u32 4294901760, %v7056_v16 }
0x14bf   :  { %v7128_v18 = vsub.f32 %v7056_v16, %v11909_v17 }
0x14c1   :  { %v7129_v19 = vand.u32 4294901760, %v7128_v18 }
0x14c3   :  { %v7130_v41 = vsub.f32 %v7128_v18, %v7129_v19 }
0x14c5   :  { %v7131_v20 = vand.u32 4294901760, %v7130_v41 }
0x14c7   :  { %10000 = vmatmul.mubr.f32.vlgmr.msra.gmra.mrb[18].mxu0 %v7131_v20  ;;  %10066 = vmatmul.mubr.f32.vlgmr.msra.gmra.mrb[30].mxu1 %v7131_v20 }
0x14c8   :  { %10665 = vmatpush3.bf16.msra.mxu0 %v11314_v28  ;;  %10701 = vmatpush3.bf16.msra.mxu1 %v11316_v29 }
0x14c9   :  { %10666 = vmatprep.subr.bf16.mxu0 %v11061_v0  ;;  %10702 = vmatprep.subr.bf16.mxu1 %v11061_v0 }
0x14ca   :  { %10010 = vmatprep.mubr.msk.f32.mxu0 %vm11062_vm0, %v11063_v1  ;;  %10076 = vmatprep.mubr.msk.f32.mxu1 %vm11062_vm0, %v11063_v1 }
0x14cc   :  { %10668 = vmatpush3.bf16.msra.mxu0 %v11319_v36  ;;  %10704 = vmatpush3.bf16.msra.mxu1 %v11321_v39 }
0x14cd   :  { %10669 = vmatprep.subr.bf16.mxu0 %v11061_v0  ;;  %10705 = vmatprep.subr.bf16.mxu1 %v11061_v0 }
0x14cf   :  { %10011 = vmatmul.mubr.f32.vlgmr.msra.gmra.mrb[18].mxu0 %v11909_v17  ;;  %10077 = vmatmul.mubr.f32.vlgmr.msra.gmra.mrb[30].mxu1 %v11909_v17 }
0x14d0   :  { %10671 = vmatpush3.bf16.msra.mxu0 %v11324_v40  ;;  %10707 = vmatpush3.bf16.msra.mxu1 %v11326_v35 }
0x14d1   :  { %10672 = vmatprep.subr.bf16.mxu0 %v11061_v0  ;;  %10708 = vmatprep.subr.bf16.mxu1 %v11061_v0 }
0x14d2   :  { %10021 = vmatprep.mubr.msk.f32.mxu0 %vm11062_vm0, %v11063_v1  ;;  %10087 = vmatprep.mubr.msk.f32.mxu1 %vm11062_vm0, %v11063_v1 }
0x14d4   :  { %10674 = vmatpush3.bf16.msra.mxu0 %v11328_v42  ;;  %10710 = vmatpush3.bf16.msra.mxu1 %v11330_v43 }
0x14d5   :  { %10675 = vmatprep.subr.bf16.mxu0 %v11061_v0  ;;  %10711 = vmatprep.subr.bf16.mxu1 %v11061_v0 }
0x14d7   :  { %10022 = vmatmul.mubr.f32.vlgmr.msra.gmra.mrb[18].mxu0 %v7128_v18  ;;  %10088 = vmatmul.mubr.f32.vlgmr.msra.gmra.mrb[30].mxu1 %v7128_v18 }
0x14d8   :  { %10677 = vmatpush3.bf16.msra.mxu0 %v11287_v51  ;;  %10713 = vmatpush3.bf16.msra.mxu1 %v11291_v55 }
0x14d9   :  { %10678 = vmatprep.subr.bf16.mxu0 %v11061_v0  ;;  %10714 = vmatprep.subr.bf16.mxu1 %v11061_v0 }
0x14da   :  { %10032 = vmatprep.mubr.msk.f32.mxu0 %vm11062_vm0, %v11063_v1  ;;  %10098 = vmatprep.mubr.msk.f32.mxu1 %vm11062_vm0, %v11063_v1 }
0x14dc   :  { %10680 = vmatpush3.bf16.msra.mxu0 %v11304_v7  ;;  %10716 = vmatpush3.bf16.msra.mxu1 %v11307_v11 }
0x14dd   :  { %10681 = vmatprep.subr.bf16.mxu0 %v11061_v0  ;;  %10717 = vmatprep.subr.bf16.mxu1 %v11061_v0 }
0x14df   :  { %10033 = vmatmul.mubr.f32.vlgmr.msra.gmra.mrb[18].mxu0 %v7129_v19  ;;  %10099 = vmatmul.mubr.f32.vlgmr.msra.gmra.mrb[30].mxu1 %v7129_v19 }
0x14e0   :  { %10683 = vmatpush3.bf16.msra.mxu0 %v11332_v44  ;;  %10719 = vmatpush3.bf16.msra.mxu1 %v11334_v45 }
0x14e1   :  { %10684 = vmatprep.subr.bf16.mxu0 %v11061_v0  ;;  %10720 = vmatprep.subr.bf16.mxu1 %v11061_v0 }
0x14e2   :  { %10043 = vmatprep.mubr.msk.f32.mxu0 %vm11062_vm0, %v11063_v1  ;;  %10109 = vmatprep.mubr.msk.f32.mxu1 %vm11062_vm0, %v11063_v1 }
0x14e4   :  { %10686 = vmatpush3.bf16.msra.mxu0 %v11336_v46  ;;  %10722 = vmatpush3.bf16.msra.mxu1 %v11338_v47 }
0x14e5   :  { %10687 = vmatprep.subr.bf16.mxu0 %v11061_v0  ;;  %10723 = vmatprep.subr.bf16.mxu1 %v11061_v0 }
0x14e7   :  { %10044 = vmatmul.mubr.f32.vlgmr.msra.gmra.mrb[18].mxu0 %v11909_v17  ;;  %10110 = vmatmul.mubr.f32.vlgmr.msra.gmra.mrb[30].mxu1 %v11909_v17 }
0x14e8   :  { %10689 = vmatpush3.bf16.msra.mxu0 %v11287_v51  ;;  %10725 = vmatpush3.bf16.msra.mxu1 %v11291_v55 }
0x14e9   :  { %10690 = vmatprep.subr.bf16.mxu0 %v11061_v0  ;;  %10726 = vmatprep.subr.bf16.mxu1 %v11061_v0 }
0x14ea   :  { %10054 = vmatprep.mubr.msk.f32.mxu0 %vm11062_vm0, %v11063_v1  ;;  %10120 = vmatprep.mubr.msk.f32.mxu1 %vm11062_vm0, %v11063_v1 }
0x14ec   :  { %10692 = vmatpush3.bf16.msra.mxu0 %v11304_v7  ;;  %10728 = vmatpush3.bf16.msra.mxu1 %v11307_v11 }
0x14ed   :  { %10729 = vmatprep.subr.bf16.mxu0 %v11061_v0 }
0x14ef   :  { %10055 = vmatmul.mubr.f32.vlgmr.msra.gmra.mrb[18].mxu0 %v11909_v17  ;;  %10121 = vmatmul.mubr.f32.vlgmr.msra.gmra.mrb[30].mxu1 %v11909_v17 }
0x14f0   :  { %10731 = vmatpush3.bf16.msra.mxu0 %v11287_v51  ;;  %10131 = vmatprep.mubr.msk.f32.mxu0 %vm11062_vm0, %v11063_v1 }
0x14f1   :  { %10732 = vmatprep.subr.bf16.mxu0 %v11061_v0 }
0x14f4   :  { %10734 = vmatpush3.bf16.msra.mxu0 %v11304_v7 }
0x14f5   :  { %10735 = vmatprep.subr.bf16.mxu0 %v11061_v0 }
0x15c2   :  { %v7539_v55 = vpop.f32.mrb[18].mxu0  ;;  %v8024_v29 = vpop.f32.mrb[30].mxu1 }
0x15c3   :  { %v10778_v11 = vadd.f32 %v11897_v53, %v8024_v29  ;;  %v10056_v39 = vpop.f32.mrb[19].mxu0  ;;  %v10122_v35 = vpop.f32.mrb[31].mxu1  ;;  %v10777_v31 = vadd.f32 %v11991_v32, %v7539_v55 }
0x15c5   :  { %11001 = vtanh.f32 %v10778_v11  ;;  %v8610_v45 = vmul.f32 -1.442695, %v10778_v11 }
0x15c7   :  { %11003 = vpow2.f32 %v8610_v45 }
0x15cf   :  { %v11002_v43 = vpop.eup %11001 }
0x15d0   :  { %8037 = vrot.lane.b32.xlu1 %v11002_v43, %s11064_s3 }
0x15d1   :  { %v11004_v47 = vpop.eup %11003 }
0x15d2   :  { %v8031_v21 = vadd.f32 1.0, %v11004_v47 }
0x15d4   :  { %11005 = vrcp.f32 %v8031_v21 }
0x15de   :  { %v11006_v23 = vpop.eup %11005 }
0x15df   :  { %v8035_v57 = vmul.f32 %v11006_v23, %v11903_v9 }
0x1642   :  { %v8038_v24 = vpop.permute.xlu1 %8037 }
0x1643   :  { %v8040_v25 = vmul.f32 %v11006_v23, %v8038_v24 }
0x1645   :  { %8042 = vrot.lane.b32.xlu0 %v8040_v25, %s11065_s21 }
0x16b7   :  { %v8043_v26 = vpop.permute.xlu0 %8042 }
0x16b8   :  { %v8045_v27 = vadd.f32 %v8043_v26, %v8035_v57 }
0x16ba   :  { %11007 = vtanh.f32 %v8045_v27 }
0x16c4   :  { %v11008_v30 = vpop.eup %11007 }
0x16c5   :  { %8048 = vrot.lane.b32.xlu1 %v11008_v30, %s11064_s3 }
0x16c9   :  { %8543 = vrot.lane.b32.xlu1 %v10767_v33, %s11066_s12 }
0x16cd   :  { %8551 = vrot.lane.b32.xlu1 %v10771_v34, %s11067_s13 }
0x16d1   :  { %8559 = vrot.lane.b32.xlu1 %v10775_v37, %s11068_s14 }
0x1737   :  { %v8049_v38 = vpop.permute.xlu1 %8048 }
0x1738   :  { %v8051_v48 = vmul.f32 %v11006_v23, %v8049_v38 }
0x173a   :  { %8053 = vrot.lane.b32.xlu0 %v8051_v48, %s11065_s21 }
0x173e   :  { %8547 = vrot.lane.b32.xlu0 %v10769_v49, %s11069_s9 }
0x1742   :  { %8555 = vrot.lane.b32.xlu0 %v10773_v22, %s11060_s24  ;;  %s11071_s24 = smov 14  }
0x1746   :  { %8563 = vrot.lane.b32.xlu0 %v10777_v31, %s11070_s15 }
0x17ac   :  { %v8054_v50 = vpop.permute.xlu0 %8053 }
0x17ad   :  { %v8055_v52 = vsel %vm69_vm1, %v8054_v50, 0 }
0x17ae   :  { %v8126_v53 = vand.u32 4294901760, %v8055_v52 }
0x17b0   :  { %v8127_v54 = vsub.f32 %v8055_v52, %v8126_v53 }
0x17b2   :  { %v8128_v56 = vand.u32 4294901760, %v8127_v54 }
0x17b4   :  { %v8129_v59 = vsub.f32 %v8127_v54, %v8128_v56 }
0x17b6   :  { %v8130_v60 = vand.u32 4294901760, %v8129_v59 }
0x17b8   :  { %10132 = vmatmul.mubr.f32.vlgmr.msra.gmra.mrb[20].mxu0 %v8130_v60 }
0x17b9   :  { %10737 = vmatpush3.bf16.msra.mxu0 %v11314_v28  ;;  %10142 = vmatprep.mubr.msk.f32.mxu0 %vm11062_vm0, %v11063_v1 }
0x17ba   :  { %10738 = vmatprep.subr.bf16.mxu0 %v11061_v0 }
0x17bd   :  { %10740 = vmatpush3.bf16.msra.mxu0 %v11319_v36 }
0x17be   :  { %10741 = vmatprep.subr.bf16.mxu0 %v11061_v0 }
0x17c0   :  { %10143 = vmatmul.mubr.f32.vlgmr.msra.gmra.mrb[20].mxu0 %v8126_v53 }
0x17c1   :  { %10743 = vmatpush3.bf16.msra.mxu0 %v11324_v40  ;;  %10153 = vmatprep.mubr.msk.f32.mxu0 %vm11062_vm0, %v11063_v1 }
0x17c2   :  { %10744 = vmatprep.subr.bf16.mxu0 %v11061_v0 }
0x17c5   :  { %10746 = vmatpush3.bf16.msra.mxu0 %v11328_v42  ;;  %v8544_v42 = vpop.permute.xlu1 %8543 }
0x17c6   :  { %10747 = vmatprep.subr.bf16.mxu0 %v11061_v0 }
0x17c8   :  { %10154 = vmatmul.mubr.f32.vlgmr.msra.gmra.mrb[20].mxu0 %v8127_v54 }
0x17c9   :  { %10749 = vmatpush3.bf16.msra.mxu0 %v11287_v51  ;;  %10164 = vmatprep.mubr.msk.f32.mxu0 %vm11062_vm0, %v11063_v1 }
0x17ca   :  { %10750 = vmatprep.subr.bf16.mxu0 %v11061_v0 }
0x17cd   :  { %10752 = vmatpush3.bf16.msra.mxu0 %v11304_v7 }
0x17ce   :  { %10753 = vmatprep.subr.bf16.mxu0 %v11061_v0 }
0x17d0   :  { %10165 = vmatmul.mubr.f32.vlgmr.msra.gmra.mrb[20].mxu0 %v8128_v56 }
0x17d1   :  { %10755 = vmatpush3.bf16.msra.mxu0 %v11332_v44  ;;  %10175 = vmatprep.mubr.msk.f32.mxu0 %vm11062_vm0, %v11063_v1  ;;  %v8548_v44 = vpop.permute.xlu0 %8547 }
0x17d2   :  { %10756 = vmatprep.subr.bf16.mxu0 %v11061_v0 }
0x17d5   :  { %10758 = vmatpush3.bf16.msra.mxu0 %v11336_v46  ;;  %v10765_v46 = vadd.f32 %v11991_v32, %v11427_v58  ;;  %v8556_v2 = vpop.permute.xlu0 %8555 }
0x17d6   :  { %10759 = vmatprep.subr.bf16.mxu0 %v11061_v0 }
0x17d8   :  { %10176 = vmatmul.mubr.f32.vlgmr.msra.gmra.mrb[20].mxu0 %v8126_v53 }
0x17d9   :  { %10761 = vmatpush3.bf16.msra.mxu0 %v11287_v51  ;;  %10186 = vmatprep.mubr.msk.f32.mxu0 %vm11062_vm0, %v11063_v1  ;;  %v8552_v51 = vpop.permute.xlu1 %8551  ;;  %v8570_v1 = vsel %vm558_vm3, %v10765_v46, %v8544_v42  ;;  %v8564_v62 = vpop.permute.xlu0 %8563 }
0x17da   :  { %10762 = vmatprep.subr.bf16.mxu0 %v11061_v0  ;;  %v8572_v0 = vsel %vm8571_vm4, %v8570_v1, %v8548_v44 }
0x17dd   :  { %10764 = vmatpush3.bf16.msra.mxu0 %v11304_v7  ;;  %v8574_v7 = vsel %vm8573_vm5, %v8572_v0, %v8552_v51  ;;  %v8560_v12 = vpop.permute.xlu1 %8559 }
0x17de   :  { %v8576_v61 = vsel %vm8575_vm6, %v8574_v7, %v8556_v2 }
0x17df   :  { %v8578_v63 = vsel %vm8577_vm7, %v8576_v61, %v8560_v12 }
0x17e0   :  { %10187 = vmatmul.mubr.f32.vlgmr.msra.gmra.mrb[20].mxu0 %v8126_v53  ;;  %v8580_v58 = vsel %vm8579_vm8, %v8578_v63, %v8564_v62 }
0x18b3   :  { %v8538_v28 = vpop.f32.mrb[20].mxu0 }
0x18b4   :  { %v10779_v36 = vadd.f32 %v11991_v32, %v8538_v28  ;;  %v10188_v40 = vpop.f32.mrb[21].mxu0 }
0x18b6   :  { %8567 = vrot.lane.b32.xlu1 %v10779_v36, %s11071_s24 }
0x1928   :  { %v8568_v3 = vpop.permute.xlu1 %8567 }
0x1929   :  { %v8582_v4 = vsel %vm8581_vm9, %v8580_v58, %v8568_v3 }
0x192a   :  { %8584 = vst.msk [vmem:[#allocation5] sm:$0xff] %vm8583_vm10, %v8582_v4 }
0x192b   :  { %11043 = shalt.err (!%p11040_p12)
}
0x192c   :  { %s11044_s1 = scalar_lea.hbm %s12062_s10, 128 }
0x192d   :  { %p11045_p13 = scmp.ne.s32.totalorder %s12062_s10, %s11044_s1  ;;  %p11048_p0 = scmp.lt.u32.totalorder %s11044_s1, %s12062_s10 }
0x192f   :  { %p11050_p1 = pnand %p11048_p0, %p11045_p13 }
0x1931   :  { %11053 = shalt.err (!%p11050_p1)
}
0x1932   :  { %8594 = dma.vmem_to_hbm [thread:$0]  %s8592_s17, 128, %s12062_s10, [#allocation4]  }
0x1933   :  { %11056 = dma.done.wait [#allocation4], 128  }
0x1934   :  { %11057 = vsyncadd [#allocation4], 4294967168 }
0x1935   :  { %8598 = vsyncpa [#allocation3], 1 }
0x1936   :  { %8599 = vsyncpa [#allocation4], 1 }

</bundles_post_ra>
